<compile_context>
chip_gen: v5e
topology: v5e:2x2
jax: 0.10.0
libtpu: 0.0.40
codegen_flags: <defaults>
</compile_context>

<pallas_src>
import functools

import jax
import jax.numpy as jnp
from jax import lax
from jax.experimental import pallas as pl
from jax.experimental.pallas import tpu as pltpu
import numpy as np


def _fused_output_block_kernel(
    x_ref,        # VMEM (1, Cin, HW)       one image, all input channels (flattened HxW)
    w1_ref,       # VMEM (9, Cin, Cin)      conv1 weights, [kh*3+kw, out, in]
    b1_ref,       # VMEM (Cin, 1)
    a1_ref,       # VMEM (Cin, 1)           PReLU slopes
    w2_ref,       # VMEM (9, Cout, Cin)
    b2_ref,       # VMEM (Cout, 1)
    a2_ref,       # VMEM (Cout, 1)
    ml_ref,       # VMEM (1, HW)            1.0 where dest column > 0     (dc = -1 taps)
    mr_ref,       # VMEM (1, HW)            1.0 where dest column < W-1   (dc = +1 taps)
    out_ref,      # VMEM (1, Cout, HW)
    xs_ref,       # VMEM scratch (Cin, HW + 2*pad)   zero-extended input
    ys_ref,       # VMEM scratch (Cin, HW + 2*pad)   zero-extended conv1 activation
    *, cin, cout, w, hw, pad):
  f32 = jnp.float32
  zeros_pad = jnp.zeros((cin, pad), f32)
  mask_l = ml_ref[...]
  mask_r = mr_ref[...]

  # Tap order: t = (dr+1)*3 + (dc+1) == kh*3 + kw  (matches the wrapper's weight layout).
  taps = tuple((dr, dc) for dr in (-1, 0, 1) for dc in (-1, 0, 1))

  def conv3x3(src_ref, w_ref, n_out):
    # out[o, p] = sum_{(dr,dc), i} w[t, o, i] * src_ext[i, p + dr*W + dc]
    # Vertical out-of-image taps hit the explicit zero halo of the scratch; the
    # horizontal wrap of the flattened +/-1 column taps is killed by the 0/1 masks.
    acc = jnp.zeros((n_out, hw), f32)
    for t, (dr, dc) in enumerate(taps):
      start = pad + dr * w + dc
      v = src_ref[:, start:start + hw]                       # (Cin, HW) dense vector loads
      if dc == -1:
        v = v * mask_l
      elif dc == 1:
        v = v * mask_r
      wt = w_ref[t]                                          # (n_out, Cin)
      acc = acc + jnp.dot(wt, v, preferred_element_type=f32)
    return acc

  # ---- Stage 1: conv1 (3x3, pad 1) + PReLU -------------------------------------
  xs_ref[:, :pad] = zeros_pad
  xs_ref[:, pad + hw:] = zeros_pad
  xs_ref[:, pad:pad + hw] = x_ref[0]

  z1 = conv3x3(xs_ref, w1_ref, cin) + b1_ref[...]
  y1 = jnp.where(z1 > 0, z1, a1_ref[...] * z1)               # PReLU (select form)

  # ---- Stage 2: conv2 (3x3, pad 1) + PReLU (activation stays in VMEM) ----------
  ys_ref[:, :pad] = zeros_pad
  ys_ref[:, pad + hw:] = zeros_pad
  ys_ref[:, pad:pad + hw] = y1

  z2 = conv3x3(ys_ref, w2_ref, cout) + b2_ref[...]
  out_ref[0] = jnp.where(z2 > 0, z2, a2_ref[...] * z2)


def _vmem_limit_bytes(required_bytes):
  """Derive a per-generation VMEM limit (64 MiB on v7x, 128 MiB on v5e/v6e)."""
  cap = 128 * 1024 * 1024
  try:
    cap = int(pltpu.get_tpu_info().vmem_capacity_bytes)
  except Exception:
    pass
  budget = (cap * 3) // 4                       # leave headroom for compiler scratch
  need = 2 * int(required_bytes) + (8 << 20)
  return max(32 << 20, min(need, budget))


def output_block_forward(x_nchw, params):
  """OutputBlock forward pass. Input/output are NCHW float32; one fused pallas_call."""
  N, Cin, H, W = x_nchw.shape
  Cout = params["conv2_w"].shape[0]
  HW = H * W
  pad = -(-(W + 1) // 128) * 128                # lane-aligned flat halo (>= W+1)
  HWp = HW + 2 * pad

  # Lane-dense flattening; contiguous reshape => no data movement (replaces jnp.pad).
  x_flat = x_nchw.reshape(N, Cin, HW)

  # Weight layout: [kh*3+kw, out_channel, in_channel]
  w1 = params["conv1_w"].transpose(2, 3, 0, 1).reshape(9, Cin, Cin)
  w2 = params["conv2_w"].transpose(2, 3, 0, 1).reshape(9, Cout, Cin)
  b1 = params["conv1_b"].reshape(Cin, 1)
  a1 = params["alpha1"].reshape(Cin, 1)
  b2 = params["conv2_b"].reshape(Cout, 1)
  a2 = params["alpha2"].reshape(Cout, 1)

  # 0/1 masks for the horizontal +/-1 taps in the flattened layout (constant-folded by XLA).
  cols = jnp.arange(W, dtype=jnp.int32)
  mask_l = jnp.tile((cols > 0).astype(jnp.float32), H).reshape(1, HW)
  mask_r = jnp.tile((cols < W - 1).astype(jnp.float32), H).reshape(1, HW)

  kernel = functools.partial(
      _fused_output_block_kernel, cin=Cin, cout=Cout, w=W, hw=HW, pad=pad)

  flops = 2 * N * HW * 9 * Cin * (Cin + Cout) + 4 * N * HW * (Cin + Cout)
  bytes_accessed = 4 * (N * Cin * HW + N * Cout * HW
                        + 9 * Cin * (Cin + Cout) + 2 * (Cin + Cout) + 2 * HW)

  # TODO(synk): if production images get large enough that (Cin+Cout)*H*W plus the
  # two scratch slabs no longer fit VMEM, add a row-tiled grid axis with a 2-row
  # halo fetched via a manual make_async_copy; not needed at this block's small sizes.
  per_image_vmem = 4 * (2 * (Cin + Cout) * HW        # double-buffered in/out blocks
                        + 2 * Cin * HWp              # zero-extended scratch slabs
                        + 6 * max(Cin, Cout) * HW)   # live in-kernel temporaries (rough)

  grid_spec = pltpu.PrefetchScalarGridSpec(
      num_scalar_prefetch=0,
      grid=(N,),
      in_specs=[
          pl.BlockSpec((1, Cin, HW), lambda n: (n, 0, 0)),
          pl.BlockSpec((9, Cin, Cin), lambda n: (0, 0, 0)),
          pl.BlockSpec((Cin, 1), lambda n: (0, 0)),
          pl.BlockSpec((Cin, 1), lambda n: (0, 0)),
          pl.BlockSpec((9, Cout, Cin), lambda n: (0, 0, 0)),
          pl.BlockSpec((Cout, 1), lambda n: (0, 0)),
          pl.BlockSpec((Cout, 1), lambda n: (0, 0)),
          pl.BlockSpec((1, HW), lambda n: (0, 0)),
          pl.BlockSpec((1, HW), lambda n: (0, 0)),
      ],
      out_specs=pl.BlockSpec((1, Cout, HW), lambda n: (n, 0, 0)),
      scratch_shapes=[pltpu.VMEM((Cin, HWp), jnp.float32),
                      pltpu.VMEM((Cin, HWp), jnp.float32)],
  )

  out = pl.pallas_call(
      kernel,
      out_shape=jax.ShapeDtypeStruct((N, Cout, HW), jnp.float32),
      grid_spec=grid_spec,
      compiler_params=pltpu.CompilerParams(
          dimension_semantics=("parallel",),
          vmem_limit_bytes=_vmem_limit_bytes(per_image_vmem),
      ),
      cost_estimate=pl.CostEstimate(
          flops=flops, transcendentals=0, bytes_accessed=bytes_accessed),
  )(x_flat, w1, b1, a1, w2, b2, a2, mask_l, mask_r)

  return out.reshape(N, Cout, H, W)


def _reference_forward(x_nchw, params):
  """Pure-JAX reference (lax.conv) for correctness checking."""
  def conv(x, w, b):
    y = lax.conv_general_dilated(
        x, w, window_strides=(1, 1), padding="SAME",
        dimension_numbers=("NCHW", "OIHW", "NCHW"))
    return y + b.reshape(1, -1, 1, 1)

  def prelu(x, alpha):
    a = alpha.reshape(1, -1, 1, 1)
    return jnp.maximum(x, 0.0) + a * jnp.minimum(x, 0.0)

  x = prelu(conv(x_nchw, params["conv1_w"], params["conv1_b"]), params["alpha1"])
  return prelu(conv(x, params["conv2_w"], params["conv2_b"]), params["alpha2"])


def make_params(key, in_channels, out_channels):
  k1, k2, k3, k4 = jax.random.split(key, 4)
  return {
      "conv1_w": jax.random.normal(k1, (in_channels, in_channels, 3, 3), jnp.float32) * 0.1,
      "conv1_b": jax.random.normal(k2, (in_channels,), jnp.float32) * 0.1,
      "conv2_w": jax.random.normal(k3, (out_channels, in_channels, 3, 3), jnp.float32) * 0.1,
      "conv2_b": jax.random.normal(k4, (out_channels,), jnp.float32) * 0.1,
      # QPReLU.__init__ fills the slope with 0.25 (per-channel)
      "alpha1": jnp.full((in_channels,), 0.25, jnp.float32),
      "alpha2": jnp.full((out_channels,), 0.25, jnp.float32),
  }


if __name__ == "__main__":
  key = jax.random.PRNGKey(0)
  kx, kp = jax.random.split(key)

  N, Cin, Cout, H, W = 2, 4, 8, 16, 16
  x = jax.random.normal(kx, (N, Cin, H, W), jnp.float32)
  params = make_params(kp, Cin, Cout)

  ref = jax.block_until_ready(_reference_forward(x, params))
  out = jax.block_until_ready(jax.jit(output_block_forward)(x, params))
  np.testing.assert_allclose(np.asarray(out), np.asarray(ref), atol=1e-4, rtol=1e-4)

  print("KERNEL_OK")
</pallas_src>

<mosaic_0001>
module attributes {stable_mosaic.version = 11 : i64} {
  func.func @_fused_output_block_kernel(%arg0: i32, %arg1: memref<1x4x256xf32, #tpu.memory_space<vmem>>, %arg2: memref<9x4x4xf32, #tpu.memory_space<vmem>>, %arg3: memref<4x1xf32, #tpu.memory_space<vmem>>, %arg4: memref<4x1xf32, #tpu.memory_space<vmem>>, %arg5: memref<9x8x4xf32, #tpu.memory_space<vmem>>, %arg6: memref<8x1xf32, #tpu.memory_space<vmem>>, %arg7: memref<8x1xf32, #tpu.memory_space<vmem>>, %arg8: memref<1x256xf32, #tpu.memory_space<vmem>>, %arg9: memref<1x256xf32, #tpu.memory_space<vmem>>, %arg10: memref<1x8x256xf32, #tpu.memory_space<vmem>>, %arg11: memref<4x512xf32, #tpu.memory_space<vmem>>, %arg12: memref<4x512xf32, #tpu.memory_space<vmem>>) attributes {dimension_semantics = [#tpu.dimension_semantics<parallel>], iteration_bounds = array<i64: 2>, scalar_prefetch = 0 : i64, scratch_operands = 2 : i64, tpu.core_type = #tpu.core_type<tc>, window_params = [{transform_indices = @transform_0, window_bounds = array<i64: 1, 4, 256>}, {pipeline_mode = #tpu.pipeline_mode<synchronous>, transform_indices = @transform_1, window_bounds = array<i64: 9, 4, 4>}, {pipeline_mode = #tpu.pipeline_mode<synchronous>, transform_indices = @transform_2, window_bounds = array<i64: 4, 1>}, {pipeline_mode = #tpu.pipeline_mode<synchronous>, transform_indices = @transform_3, window_bounds = array<i64: 4, 1>}, {pipeline_mode = #tpu.pipeline_mode<synchronous>, transform_indices = @transform_4, window_bounds = array<i64: 9, 8, 4>}, {pipeline_mode = #tpu.pipeline_mode<synchronous>, transform_indices = @transform_5, window_bounds = array<i64: 8, 1>}, {pipeline_mode = #tpu.pipeline_mode<synchronous>, transform_indices = @transform_6, window_bounds = array<i64: 8, 1>}, {pipeline_mode = #tpu.pipeline_mode<synchronous>, transform_indices = @transform_7, window_bounds = array<i64: 1, 256>}, {pipeline_mode = #tpu.pipeline_mode<synchronous>, transform_indices = @transform_8, window_bounds = array<i64: 1, 256>}, {transform_indices = @transform_9, window_bounds = array<i64: 1, 8, 256>}]} {
    %cst = arith.constant 0.000000e+00 : f32
    %0 = vector.broadcast %cst : f32 to vector<4x128xf32>
    %c0 = arith.constant 0 : index
    %c0_0 = arith.constant 0 : index
    %1 = vector.load %arg8[%c0, %c0_0] : memref<1x256xf32, #tpu.memory_space<vmem>>, vector<1x256xf32>
    %c0_1 = arith.constant 0 : index
    %c0_2 = arith.constant 0 : index
    %2 = vector.load %arg9[%c0_1, %c0_2] : memref<1x256xf32, #tpu.memory_space<vmem>>, vector<1x256xf32>
    %c0_3 = arith.constant 0 : index
    %c0_4 = arith.constant 0 : index
    %3 = vector.load %arg11[%c0_3, %c0_4] : memref<4x512xf32, #tpu.memory_space<vmem>>, vector<4x128xf32>
    tpu.vector_store %arg11[%c0_3, %c0_4], %0 {strides = array<i32>} : memref<4x512xf32, #tpu.memory_space<vmem>>, vector<4x128xf32>,
    %c0_5 = arith.constant 0 : index
    %c384 = arith.constant 384 : index
    %4 = vector.load %arg11[%c0_5, %c384] : memref<4x512xf32, #tpu.memory_space<vmem>>, vector<4x128xf32>
    tpu.vector_store %arg11[%c0_5, %c384], %0 {strides = array<i32>} : memref<4x512xf32, #tpu.memory_space<vmem>>, vector<4x128xf32>,
    %c0_6 = arith.constant 0 : index
    %c0_7 = arith.constant 0 : index
    %c0_8 = arith.constant 0 : index
    %5 = vector.load %arg1[%c0_6, %c0_7, %c0_8] : memref<1x4x256xf32, #tpu.memory_space<vmem>>, vector<1x4x256xf32>
    %6 = vector.shape_cast %5 : vector<1x4x256xf32> to vector<4x256xf32>
    %c0_9 = arith.constant 0 : index
    %c128 = arith.constant 128 : index
    %7 = vector.load %arg11[%c0_9, %c128] : memref<4x512xf32, #tpu.memory_space<vmem>>, vector<4x256xf32>
    tpu.vector_store %arg11[%c0_9, %c128], %6 {strides = array<i32>} : memref<4x512xf32, #tpu.memory_space<vmem>>, vector<4x256xf32>,
    %cst_10 = arith.constant 0.000000e+00 : f32
    %8 = vector.broadcast %cst_10 : f32 to vector<4x256xf32>
    %c0_11 = arith.constant 0 : index
    %c111 = arith.constant 111 : index
    %9 = vector.load %arg11[%c0_11, %c111] : memref<4x512xf32, #tpu.memory_space<vmem>>, vector<4x256xf32>
    %10 = vector.broadcast %1 : vector<1x256xf32> to vector<4x256xf32>
    %11 = arith.mulf %9, %10 : vector<4x256xf32>
    %c0_12 = arith.constant 0 : index
    %c0_13 = arith.constant 0 : index
    %c0_14 = arith.constant 0 : index
    %12 = vector.load %arg2[%c0_12, %c0_13, %c0_14] : memref<9x4x4xf32, #tpu.memory_space<vmem>>, vector<1x4x4xf32>
    %13 = vector.shape_cast %12 : vector<1x4x4xf32> to vector<4x4xf32>
    %cst_15 = arith.constant dense<0.000000e+00> : vector<4x256xf32>
    %14 = tpu.matmul %13, %11, %cst_15 {dimension_numbers = #tpu.dot_dimension_numbers<[1], [0], [0], [1], [0, 0, 1, 1], [], []>} : vector<4x4xf32>, vector<4x256xf32>, vector<4x256xf32> -> vector<4x256xf32>
    %15 = arith.addf %8, %14 : vector<4x256xf32>
    %c0_16 = arith.constant 0 : index
    %c112 = arith.constant 112 : index
    %16 = vector.load %arg11[%c0_16, %c112] : memref<4x512xf32, #tpu.memory_space<vmem>>, vector<4x256xf32>
    %c1 = arith.constant 1 : index
    %c0_17 = arith.constant 0 : index
    %c0_18 = arith.constant 0 : index
    %17 = vector.load %arg2[%c1, %c0_17, %c0_18] : memref<9x4x4xf32, #tpu.memory_space<vmem>>, vector<1x4x4xf32>
    %18 = vector.shape_cast %17 : vector<1x4x4xf32> to vector<4x4xf32>
    %cst_19 = arith.constant dense<0.000000e+00> : vector<4x256xf32>
    %19 = tpu.matmul %18, %16, %cst_19 {dimension_numbers = #tpu.dot_dimension_numbers<[1], [0], [0], [1], [0, 0, 1, 1], [], []>} : vector<4x4xf32>, vector<4x256xf32>, vector<4x256xf32> -> vector<4x256xf32>
    %20 = arith.addf %15, %19 : vector<4x256xf32>
    %c0_20 = arith.constant 0 : index
    %c113 = arith.constant 113 : index
    %21 = vector.load %arg11[%c0_20, %c113] : memref<4x512xf32, #tpu.memory_space<vmem>>, vector<4x256xf32>
    %22 = vector.broadcast %2 : vector<1x256xf32> to vector<4x256xf32>
    %23 = arith.mulf %21, %22 : vector<4x256xf32>
    %c2 = arith.constant 2 : index
    %c0_21 = arith.constant 0 : index
    %c0_22 = arith.constant 0 : index
    %24 = vector.load %arg2[%c2, %c0_21, %c0_22] : memref<9x4x4xf32, #tpu.memory_space<vmem>>, vector<1x4x4xf32>
    %25 = vector.shape_cast %24 : vector<1x4x4xf32> to vector<4x4xf32>
    %cst_23 = arith.constant dense<0.000000e+00> : vector<4x256xf32>
    %26 = tpu.matmul %25, %23, %cst_23 {dimension_numbers = #tpu.dot_dimension_numbers<[1], [0], [0], [1], [0, 0, 1, 1], [], []>} : vector<4x4xf32>, vector<4x256xf32>, vector<4x256xf32> -> vector<4x256xf32>
    %27 = arith.addf %20, %26 : vector<4x256xf32>
    %c0_24 = arith.constant 0 : index
    %c127 = arith.constant 127 : index
    %28 = vector.load %arg11[%c0_24, %c127] : memref<4x512xf32, #tpu.memory_space<vmem>>, vector<4x256xf32>
    %29 = vector.broadcast %1 : vector<1x256xf32> to vector<4x256xf32>
    %30 = arith.mulf %28, %29 : vector<4x256xf32>
    %c3 = arith.constant 3 : index
    %c0_25 = arith.constant 0 : index
    %c0_26 = arith.constant 0 : index
    %31 = vector.load %arg2[%c3, %c0_25, %c0_26] : memref<9x4x4xf32, #tpu.memory_space<vmem>>, vector<1x4x4xf32>
    %32 = vector.shape_cast %31 : vector<1x4x4xf32> to vector<4x4xf32>
    %cst_27 = arith.constant dense<0.000000e+00> : vector<4x256xf32>
    %33 = tpu.matmul %32, %30, %cst_27 {dimension_numbers = #tpu.dot_dimension_numbers<[1], [0], [0], [1], [0, 0, 1, 1], [], []>} : vector<4x4xf32>, vector<4x256xf32>, vector<4x256xf32> -> vector<4x256xf32>
    %34 = arith.addf %27, %33 : vector<4x256xf32>
    %c0_28 = arith.constant 0 : index
    %c128_29 = arith.constant 128 : index
    %35 = vector.load %arg11[%c0_28, %c128_29] : memref<4x512xf32, #tpu.memory_space<vmem>>, vector<4x256xf32>
    %c4 = arith.constant 4 : index
    %c0_30 = arith.constant 0 : index
    %c0_31 = arith.constant 0 : index
    %36 = vector.load %arg2[%c4, %c0_30, %c0_31] : memref<9x4x4xf32, #tpu.memory_space<vmem>>, vector<1x4x4xf32>
    %37 = vector.shape_cast %36 : vector<1x4x4xf32> to vector<4x4xf32>
    %cst_32 = arith.constant dense<0.000000e+00> : vector<4x256xf32>
    %38 = tpu.matmul %37, %35, %cst_32 {dimension_numbers = #tpu.dot_dimension_numbers<[1], [0], [0], [1], [0, 0, 1, 1], [], []>} : vector<4x4xf32>, vector<4x256xf32>, vector<4x256xf32> -> vector<4x256xf32>
    %39 = arith.addf %34, %38 : vector<4x256xf32>
    %c0_33 = arith.constant 0 : index
    %c129 = arith.constant 129 : index
    %40 = vector.load %arg11[%c0_33, %c129] : memref<4x512xf32, #tpu.memory_space<vmem>>, vector<4x256xf32>
    %41 = vector.broadcast %2 : vector<1x256xf32> to vector<4x256xf32>
    %42 = arith.mulf %40, %41 : vector<4x256xf32>
    %c5 = arith.constant 5 : index
    %c0_34 = arith.constant 0 : index
    %c0_35 = arith.constant 0 : index
    %43 = vector.load %arg2[%c5, %c0_34, %c0_35] : memref<9x4x4xf32, #tpu.memory_space<vmem>>, vector<1x4x4xf32>
    %44 = vector.shape_cast %43 : vector<1x4x4xf32> to vector<4x4xf32>
    %cst_36 = arith.constant dense<0.000000e+00> : vector<4x256xf32>
    %45 = tpu.matmul %44, %42, %cst_36 {dimension_numbers = #tpu.dot_dimension_numbers<[1], [0], [0], [1], [0, 0, 1, 1], [], []>} : vector<4x4xf32>, vector<4x256xf32>, vector<4x256xf32> -> vector<4x256xf32>
    %46 = arith.addf %39, %45 : vector<4x256xf32>
    %c0_37 = arith.constant 0 : index
    %c143 = arith.constant 143 : index
    %47 = vector.load %arg11[%c0_37, %c143] : memref<4x512xf32, #tpu.memory_space<vmem>>, vector<4x256xf32>
    %48 = vector.broadcast %1 : vector<1x256xf32> to vector<4x256xf32>
    %49 = arith.mulf %47, %48 : vector<4x256xf32>
    %c6 = arith.constant 6 : index
    %c0_38 = arith.constant 0 : index
    %c0_39 = arith.constant 0 : index
    %50 = vector.load %arg2[%c6, %c0_38, %c0_39] : memref<9x4x4xf32, #tpu.memory_space<vmem>>, vector<1x4x4xf32>
    %51 = vector.shape_cast %50 : vector<1x4x4xf32> to vector<4x4xf32>
    %cst_40 = arith.constant dense<0.000000e+00> : vector<4x256xf32>
    %52 = tpu.matmul %51, %49, %cst_40 {dimension_numbers = #tpu.dot_dimension_numbers<[1], [0], [0], [1], [0, 0, 1, 1], [], []>} : vector<4x4xf32>, vector<4x256xf32>, vector<4x256xf32> -> vector<4x256xf32>
    %53 = arith.addf %46, %52 : vector<4x256xf32>
    %c0_41 = arith.constant 0 : index
    %c144 = arith.constant 144 : index
    %54 = vector.load %arg11[%c0_41, %c144] : memref<4x512xf32, #tpu.memory_space<vmem>>, vector<4x256xf32>
    %c7 = arith.constant 7 : index
    %c0_42 = arith.constant 0 : index
    %c0_43 = arith.constant 0 : index
    %55 = vector.load %arg2[%c7, %c0_42, %c0_43] : memref<9x4x4xf32, #tpu.memory_space<vmem>>, vector<1x4x4xf32>
    %56 = vector.shape_cast %55 : vector<1x4x4xf32> to vector<4x4xf32>
    %cst_44 = arith.constant dense<0.000000e+00> : vector<4x256xf32>
    %57 = tpu.matmul %56, %54, %cst_44 {dimension_numbers = #tpu.dot_dimension_numbers<[1], [0], [0], [1], [0, 0, 1, 1], [], []>} : vector<4x4xf32>, vector<4x256xf32>, vector<4x256xf32> -> vector<4x256xf32>
    %58 = arith.addf %53, %57 : vector<4x256xf32>
    %c0_45 = arith.constant 0 : index
    %c145 = arith.constant 145 : index
    %59 = vector.load %arg11[%c0_45, %c145] : memref<4x512xf32, #tpu.memory_space<vmem>>, vector<4x256xf32>
    %60 = vector.broadcast %2 : vector<1x256xf32> to vector<4x256xf32>
    %61 = arith.mulf %59, %60 : vector<4x256xf32>
    %c8 = arith.constant 8 : index
    %c0_46 = arith.constant 0 : index
    %c0_47 = arith.constant 0 : index
    %62 = vector.load %arg2[%c8, %c0_46, %c0_47] : memref<9x4x4xf32, #tpu.memory_space<vmem>>, vector<1x4x4xf32>
    %63 = vector.shape_cast %62 : vector<1x4x4xf32> to vector<4x4xf32>
    %cst_48 = arith.constant dense<0.000000e+00> : vector<4x256xf32>
    %64 = tpu.matmul %63, %61, %cst_48 {dimension_numbers = #tpu.dot_dimension_numbers<[1], [0], [0], [1], [0, 0, 1, 1], [], []>} : vector<4x4xf32>, vector<4x256xf32>, vector<4x256xf32> -> vector<4x256xf32>
    %65 = arith.addf %58, %64 : vector<4x256xf32>
    %c0_49 = arith.constant 0 : index
    %c0_50 = arith.constant 0 : index
    %66 = vector.load %arg3[%c0_49, %c0_50] : memref<4x1xf32, #tpu.memory_space<vmem>>, vector<4x1xf32>
    %67 = vector.broadcast %66 : vector<4x1xf32> to vector<4x256xf32>
    %68 = arith.addf %65, %67 : vector<4x256xf32>
    %cst_51 = arith.constant 0.000000e+00 : f32
    %69 = vector.broadcast %cst_51 : f32 to vector<4x256xf32>
    %70 = arith.cmpf ogt, %68, %69 : vector<4x256xf32>
    %c0_52 = arith.constant 0 : index
    %c0_53 = arith.constant 0 : index
    %71 = vector.load %arg4[%c0_52, %c0_53] : memref<4x1xf32, #tpu.memory_space<vmem>>, vector<4x1xf32>
    %72 = vector.broadcast %71 : vector<4x1xf32> to vector<4x256xf32>
    %73 = arith.mulf %72, %68 : vector<4x256xf32>
    %74 = arith.select %70, %68, %73 : vector<4x256xi1>, vector<4x256xf32>
    %c0_54 = arith.constant 0 : index
    %c0_55 = arith.constant 0 : index
    %75 = vector.load %arg12[%c0_54, %c0_55] : memref<4x512xf32, #tpu.memory_space<vmem>>, vector<4x128xf32>
    tpu.vector_store %arg12[%c0_54, %c0_55], %0 {strides = array<i32>} : memref<4x512xf32, #tpu.memory_space<vmem>>, vector<4x128xf32>,
    %c0_56 = arith.constant 0 : index
    %c384_57 = arith.constant 384 : index
    %76 = vector.load %arg12[%c0_56, %c384_57] : memref<4x512xf32, #tpu.memory_space<vmem>>, vector<4x128xf32>
    tpu.vector_store %arg12[%c0_56, %c384_57], %0 {strides = array<i32>} : memref<4x512xf32, #tpu.memory_space<vmem>>, vector<4x128xf32>,
    %c0_58 = arith.constant 0 : index
    %c128_59 = arith.constant 128 : index
    %77 = vector.load %arg12[%c0_58, %c128_59] : memref<4x512xf32, #tpu.memory_space<vmem>>, vector<4x256xf32>
    tpu.vector_store %arg12[%c0_58, %c128_59], %74 {strides = array<i32>} : memref<4x512xf32, #tpu.memory_space<vmem>>, vector<4x256xf32>,
    %cst_60 = arith.constant 0.000000e+00 : f32
    %78 = vector.broadcast %cst_60 : f32 to vector<8x256xf32>
    %c0_61 = arith.constant 0 : index
    %c111_62 = arith.constant 111 : index
    %79 = vector.load %arg12[%c0_61, %c111_62] : memref<4x512xf32, #tpu.memory_space<vmem>>, vector<4x256xf32>
    %80 = vector.broadcast %1 : vector<1x256xf32> to vector<4x256xf32>
    %81 = arith.mulf %79, %80 : vector<4x256xf32>
    %c0_63 = arith.constant 0 : index
    %c0_64 = arith.constant 0 : index
    %c0_65 = arith.constant 0 : index
    %82 = vector.load %arg5[%c0_63, %c0_64, %c0_65] : memref<9x8x4xf32, #tpu.memory_space<vmem>>, vector<1x8x4xf32>
    %83 = vector.shape_cast %82 : vector<1x8x4xf32> to vector<8x4xf32>
    %cst_66 = arith.constant dense<0.000000e+00> : vector<8x256xf32>
    %84 = tpu.matmul %83, %81, %cst_66 {dimension_numbers = #tpu.dot_dimension_numbers<[1], [0], [0], [1], [0, 0, 1, 1], [], []>} : vector<8x4xf32>, vector<4x256xf32>, vector<8x256xf32> -> vector<8x256xf32>
    %85 = arith.addf %78, %84 : vector<8x256xf32>
    %c0_67 = arith.constant 0 : index
    %c112_68 = arith.constant 112 : index
    %86 = vector.load %arg12[%c0_67, %c112_68] : memref<4x512xf32, #tpu.memory_space<vmem>>, vector<4x256xf32>
    %c1_69 = arith.constant 1 : index
    %c0_70 = arith.constant 0 : index
    %c0_71 = arith.constant 0 : index
    %87 = vector.load %arg5[%c1_69, %c0_70, %c0_71] : memref<9x8x4xf32, #tpu.memory_space<vmem>>, vector<1x8x4xf32>
    %88 = vector.shape_cast %87 : vector<1x8x4xf32> to vector<8x4xf32>
    %cst_72 = arith.constant dense<0.000000e+00> : vector<8x256xf32>
    %89 = tpu.matmul %88, %86, %cst_72 {dimension_numbers = #tpu.dot_dimension_numbers<[1], [0], [0], [1], [0, 0, 1, 1], [], []>} : vector<8x4xf32>, vector<4x256xf32>, vector<8x256xf32> -> vector<8x256xf32>
    %90 = arith.addf %85, %89 : vector<8x256xf32>
    %c0_73 = arith.constant 0 : index
    %c113_74 = arith.constant 113 : index
    %91 = vector.load %arg12[%c0_73, %c113_74] : memref<4x512xf32, #tpu.memory_space<vmem>>, vector<4x256xf32>
    %92 = vector.broadcast %2 : vector<1x256xf32> to vector<4x256xf32>
    %93 = arith.mulf %91, %92 : vector<4x256xf32>
    %c2_75 = arith.constant 2 : index
    %c0_76 = arith.constant 0 : index
    %c0_77 = arith.constant 0 : index
    %94 = vector.load %arg5[%c2_75, %c0_76, %c0_77] : memref<9x8x4xf32, #tpu.memory_space<vmem>>, vector<1x8x4xf32>
    %95 = vector.shape_cast %94 : vector<1x8x4xf32> to vector<8x4xf32>
    %cst_78 = arith.constant dense<0.000000e+00> : vector<8x256xf32>
    %96 = tpu.matmul %95, %93, %cst_78 {dimension_numbers = #tpu.dot_dimension_numbers<[1], [0], [0], [1], [0, 0, 1, 1], [], []>} : vector<8x4xf32>, vector<4x256xf32>, vector<8x256xf32> -> vector<8x256xf32>
    %97 = arith.addf %90, %96 : vector<8x256xf32>
    %c0_79 = arith.constant 0 : index
    %c127_80 = arith.constant 127 : index
    %98 = vector.load %arg12[%c0_79, %c127_80] : memref<4x512xf32, #tpu.memory_space<vmem>>, vector<4x256xf32>
    %99 = vector.broadcast %1 : vector<1x256xf32> to vector<4x256xf32>
    %100 = arith.mulf %98, %99 : vector<4x256xf32>
    %c3_81 = arith.constant 3 : index
    %c0_82 = arith.constant 0 : index
    %c0_83 = arith.constant 0 : index
    %101 = vector.load %arg5[%c3_81, %c0_82, %c0_83] : memref<9x8x4xf32, #tpu.memory_space<vmem>>, vector<1x8x4xf32>
    %102 = vector.shape_cast %101 : vector<1x8x4xf32> to vector<8x4xf32>
    %cst_84 = arith.constant dense<0.000000e+00> : vector<8x256xf32>
    %103 = tpu.matmul %102, %100, %cst_84 {dimension_numbers = #tpu.dot_dimension_numbers<[1], [0], [0], [1], [0, 0, 1, 1], [], []>} : vector<8x4xf32>, vector<4x256xf32>, vector<8x256xf32> -> vector<8x256xf32>
    %104 = arith.addf %97, %103 : vector<8x256xf32>
    %c0_85 = arith.constant 0 : index
    %c128_86 = arith.constant 128 : index
    %105 = vector.load %arg12[%c0_85, %c128_86] : memref<4x512xf32, #tpu.memory_space<vmem>>, vector<4x256xf32>
    %c4_87 = arith.constant 4 : index
    %c0_88 = arith.constant 0 : index
    %c0_89 = arith.constant 0 : index
    %106 = vector.load %arg5[%c4_87, %c0_88, %c0_89] : memref<9x8x4xf32, #tpu.memory_space<vmem>>, vector<1x8x4xf32>
    %107 = vector.shape_cast %106 : vector<1x8x4xf32> to vector<8x4xf32>
    %cst_90 = arith.constant dense<0.000000e+00> : vector<8x256xf32>
    %108 = tpu.matmul %107, %105, %cst_90 {dimension_numbers = #tpu.dot_dimension_numbers<[1], [0], [0], [1], [0, 0, 1, 1], [], []>} : vector<8x4xf32>, vector<4x256xf32>, vector<8x256xf32> -> vector<8x256xf32>
    %109 = arith.addf %104, %108 : vector<8x256xf32>
    %c0_91 = arith.constant 0 : index
    %c129_92 = arith.constant 129 : index
    %110 = vector.load %arg12[%c0_91, %c129_92] : memref<4x512xf32, #tpu.memory_space<vmem>>, vector<4x256xf32>
    %111 = vector.broadcast %2 : vector<1x256xf32> to vector<4x256xf32>
    %112 = arith.mulf %110, %111 : vector<4x256xf32>
    %c5_93 = arith.constant 5 : index
    %c0_94 = arith.constant 0 : index
    %c0_95 = arith.constant 0 : index
    %113 = vector.load %arg5[%c5_93, %c0_94, %c0_95] : memref<9x8x4xf32, #tpu.memory_space<vmem>>, vector<1x8x4xf32>
    %114 = vector.shape_cast %113 : vector<1x8x4xf32> to vector<8x4xf32>
    %cst_96 = arith.constant dense<0.000000e+00> : vector<8x256xf32>
    %115 = tpu.matmul %114, %112, %cst_96 {dimension_numbers = #tpu.dot_dimension_numbers<[1], [0], [0], [1], [0, 0, 1, 1], [], []>} : vector<8x4xf32>, vector<4x256xf32>, vector<8x256xf32> -> vector<8x256xf32>
    %116 = arith.addf %109, %115 : vector<8x256xf32>
    %c0_97 = arith.constant 0 : index
    %c143_98 = arith.constant 143 : index
    %117 = vector.load %arg12[%c0_97, %c143_98] : memref<4x512xf32, #tpu.memory_space<vmem>>, vector<4x256xf32>
    %118 = vector.broadcast %1 : vector<1x256xf32> to vector<4x256xf32>
    %119 = arith.mulf %117, %118 : vector<4x256xf32>
    %c6_99 = arith.constant 6 : index
    %c0_100 = arith.constant 0 : index
    %c0_101 = arith.constant 0 : index
    %120 = vector.load %arg5[%c6_99, %c0_100, %c0_101] : memref<9x8x4xf32, #tpu.memory_space<vmem>>, vector<1x8x4xf32>
    %121 = vector.shape_cast %120 : vector<1x8x4xf32> to vector<8x4xf32>
    %cst_102 = arith.constant dense<0.000000e+00> : vector<8x256xf32>
    %122 = tpu.matmul %121, %119, %cst_102 {dimension_numbers = #tpu.dot_dimension_numbers<[1], [0], [0], [1], [0, 0, 1, 1], [], []>} : vector<8x4xf32>, vector<4x256xf32>, vector<8x256xf32> -> vector<8x256xf32>
    %123 = arith.addf %116, %122 : vector<8x256xf32>
    %c0_103 = arith.constant 0 : index
    %c144_104 = arith.constant 144 : index
    %124 = vector.load %arg12[%c0_103, %c144_104] : memref<4x512xf32, #tpu.memory_space<vmem>>, vector<4x256xf32>
    %c7_105 = arith.constant 7 : index
    %c0_106 = arith.constant 0 : index
    %c0_107 = arith.constant 0 : index
    %125 = vector.load %arg5[%c7_105, %c0_106, %c0_107] : memref<9x8x4xf32, #tpu.memory_space<vmem>>, vector<1x8x4xf32>
    %126 = vector.shape_cast %125 : vector<1x8x4xf32> to vector<8x4xf32>
    %cst_108 = arith.constant dense<0.000000e+00> : vector<8x256xf32>
    %127 = tpu.matmul %126, %124, %cst_108 {dimension_numbers = #tpu.dot_dimension_numbers<[1], [0], [0], [1], [0, 0, 1, 1], [], []>} : vector<8x4xf32>, vector<4x256xf32>, vector<8x256xf32> -> vector<8x256xf32>
    %128 = arith.addf %123, %127 : vector<8x256xf32>
    %c0_109 = arith.constant 0 : index
    %c145_110 = arith.constant 145 : index
    %129 = vector.load %arg12[%c0_109, %c145_110] : memref<4x512xf32, #tpu.memory_space<vmem>>, vector<4x256xf32>
    %130 = vector.broadcast %2 : vector<1x256xf32> to vector<4x256xf32>
    %131 = arith.mulf %129, %130 : vector<4x256xf32>
    %c8_111 = arith.constant 8 : index
    %c0_112 = arith.constant 0 : index
    %c0_113 = arith.constant 0 : index
    %132 = vector.load %arg5[%c8_111, %c0_112, %c0_113] : memref<9x8x4xf32, #tpu.memory_space<vmem>>, vector<1x8x4xf32>
    %133 = vector.shape_cast %132 : vector<1x8x4xf32> to vector<8x4xf32>
    %cst_114 = arith.constant dense<0.000000e+00> : vector<8x256xf32>
    %134 = tpu.matmul %133, %131, %cst_114 {dimension_numbers = #tpu.dot_dimension_numbers<[1], [0], [0], [1], [0, 0, 1, 1], [], []>} : vector<8x4xf32>, vector<4x256xf32>, vector<8x256xf32> -> vector<8x256xf32>
    %135 = arith.addf %128, %134 : vector<8x256xf32>
    %c0_115 = arith.constant 0 : index
    %c0_116 = arith.constant 0 : index
    %136 = vector.load %arg6[%c0_115, %c0_116] : memref<8x1xf32, #tpu.memory_space<vmem>>, vector<8x1xf32>
    %137 = vector.broadcast %136 : vector<8x1xf32> to vector<8x256xf32>
    %138 = arith.addf %135, %137 : vector<8x256xf32>
    %cst_117 = arith.constant 0.000000e+00 : f32
    %139 = vector.broadcast %cst_117 : f32 to vector<8x256xf32>
    %140 = arith.cmpf ogt, %138, %139 : vector<8x256xf32>
    %c0_118 = arith.constant 0 : index
    %c0_119 = arith.constant 0 : index
    %141 = vector.load %arg7[%c0_118, %c0_119] : memref<8x1xf32, #tpu.memory_space<vmem>>, vector<8x1xf32>
    %142 = vector.broadcast %141 : vector<8x1xf32> to vector<8x256xf32>
    %143 = arith.mulf %142, %138 : vector<8x256xf32>
    %144 = arith.select %140, %138, %143 : vector<8x256xi1>, vector<8x256xf32>
    %c0_120 = arith.constant 0 : index
    %c0_121 = arith.constant 0 : index
    %c0_122 = arith.constant 0 : index
    %145 = vector.load %arg10[%c0_120, %c0_121, %c0_122] : memref<1x8x256xf32, #tpu.memory_space<vmem>>, vector<1x8x256xf32>
    %146 = vector.shape_cast %145 : vector<1x8x256xf32> to vector<8x256xf32>
    %147 = vector.shape_cast %144 : vector<8x256xf32> to vector<1x8x256xf32>
    tpu.vector_store %arg10[%c0_120, %c0_121, %c0_122], %147 {strides = array<i32>} : memref<1x8x256xf32, #tpu.memory_space<vmem>>, vector<1x8x256xf32>,
    return
  }
  func.func @transform_0(%arg0: i32) -> (i32, i32, i32) {
    %c0_i32 = arith.constant 0 : i32
    %c0_i32_0 = arith.constant 0 : i32
    %c0_i32_1 = arith.constant 0 : i32
    return %arg0, %c0_i32, %c0_i32_0 : i32, i32, i32
  }
  func.func @transform_1(%arg0: i32) -> (i32, i32, i32) {
    %c0_i32 = arith.constant 0 : i32
    %c0_i32_0 = arith.constant 0 : i32
    %c0_i32_1 = arith.constant 0 : i32
    %c0_i32_2 = arith.constant 0 : i32
    return %c0_i32, %c0_i32_0, %c0_i32_1 : i32, i32, i32
  }
  func.func @transform_2(%arg0: i32) -> (i32, i32) {
    %c0_i32 = arith.constant 0 : i32
    %c0_i32_0 = arith.constant 0 : i32
    %c0_i32_1 = arith.constant 0 : i32
    return %c0_i32, %c0_i32_0 : i32, i32
  }
  func.func @transform_3(%arg0: i32) -> (i32, i32) {
    %c0_i32 = arith.constant 0 : i32
    %c0_i32_0 = arith.constant 0 : i32
    %c0_i32_1 = arith.constant 0 : i32
    return %c0_i32, %c0_i32_0 : i32, i32
  }
  func.func @transform_4(%arg0: i32) -> (i32, i32, i32) {
    %c0_i32 = arith.constant 0 : i32
    %c0_i32_0 = arith.constant 0 : i32
    %c0_i32_1 = arith.constant 0 : i32
    %c0_i32_2 = arith.constant 0 : i32
    return %c0_i32, %c0_i32_0, %c0_i32_1 : i32, i32, i32
  }
  func.func @transform_5(%arg0: i32) -> (i32, i32) {
    %c0_i32 = arith.constant 0 : i32
    %c0_i32_0 = arith.constant 0 : i32
    %c0_i32_1 = arith.constant 0 : i32
    return %c0_i32, %c0_i32_0 : i32, i32
  }
  func.func @transform_6(%arg0: i32) -> (i32, i32) {
    %c0_i32 = arith.constant 0 : i32
    %c0_i32_0 = arith.constant 0 : i32
    %c0_i32_1 = arith.constant 0 : i32
    return %c0_i32, %c0_i32_0 : i32, i32
  }
  func.func @transform_7(%arg0: i32) -> (i32, i32) {
    %c0_i32 = arith.constant 0 : i32
    %c0_i32_0 = arith.constant 0 : i32
    %c0_i32_1 = arith.constant 0 : i32
    return %c0_i32, %c0_i32_0 : i32, i32
  }
  func.func @transform_8(%arg0: i32) -> (i32, i32) {
    %c0_i32 = arith.constant 0 : i32
    %c0_i32_0 = arith.constant 0 : i32
    %c0_i32_1 = arith.constant 0 : i32
    return %c0_i32, %c0_i32_0 : i32, i32
  }
  func.func @transform_9(%arg0: i32) -> (i32, i32, i32) {
    %c0_i32 = arith.constant 0 : i32
    %c0_i32_0 = arith.constant 0 : i32
    %c0_i32_1 = arith.constant 0 : i32
    return %arg0, %c0_i32, %c0_i32_0 : i32, i32, i32
  }
}

</mosaic_0001>

<bundles_post_ra>
// kernel: tile.18
= control target key start
LH: loop header
LB: loop body
LE: loop exit
PB: predicated region body
PF: predicated region fallthrough
CT: control target
= control target key end

     0   :  { %s28_s0 = inlined_call_operand.vmem [shape: f32[16], index: 0, kind: input, shape index: {}]   ;;  %s29_s1 = inlined_call_operand.vmem [shape: f32[16,16], index: 1, kind: output, shape index: {}]  }
   0x1   :  { %v4_v0 = vld [vmem:[%s28_s0] ss:$0 sm:$0xff] }
   0x2   :  { %5 = vst [vmem:[%s29_s1] sm:$0xff] %v4_v0 }
   0x3   :  { %8 = vst [vmem:[%s29_s1 + $0x8] sm:$0xff] %v4_v0 }

// kernel: tile.19
= control target key start
LH: loop header
LB: loop body
LE: loop exit
PB: predicated region body
PF: predicated region fallthrough
CT: control target
= control target key end

     0   :  { %s7_s6 = smov 3  ;;  %s21_s9 = smov 3  ;;  %vm4_vm0 = vcmask 130048   ;;  %vm11_vm1 = vcmask 1048448   ;;  %vm18_vm2 = vcmask 917248   ;;  %vm25_vm3 = vcmask 786048   ;;  %s129_s0 = inlined_call_operand.vmem [shape: f32[16,16], index: 0, kind: input, shape index: {}]   ;;  %s130_s1 = inlined_call_operand.vmem [shape: f32[1,256], index: 1, kind: output, shape index: {}]  }
   0x1   :  { %v67_v0 = vld [vmem:[%s129_s0 + $0x7] ss:$8 sm:%s7_s6]   ;;  %s82_s10 = smov 112   ;;  %v69_v1 = vld [vmem:[%s129_s0 + $0x5] ss:$8 sm:%s21_s9]   ;;  %s83_s13 = smov 80  }
   0x2   :  { %9 = vrot.lane.b32.xlu0 %v67_v0, %s82_s10  ;;  %23 = vrot.lane.b32.xlu1 %v69_v1, %s83_s13  ;;  %s14_s14 = smov 3  ;;  %s28_s15 = smov 3  ;;  %vm32_vm4 = vcmask 654848   ;;  %vm39_vm5 = vcmask 523648   ;;  %vm46_vm6 = vcmask 392448   ;;  %vm53_vm7 = vcmask 261248  }
   0x3   :  { %s35_s16 = smov 3  ;;  %v68_v3 = vld [vmem:[%s129_s0 + $0x6] ss:$8 sm:%s14_s14]   ;;  %s84_s21 = smov 48   ;;  %v70_v4 = vld [vmem:[%s129_s0 + $0x4] ss:$8 sm:%s28_s15]  }
   0x4   :  { %v71_v2 = vld [vmem:[%s129_s0 + $0x3] ss:$8 sm:%s35_s16]   ;;  %s42_s24 = smov 3  ;;  %s85_s25 = smov 96  }
   0x5   :  { %37 = vrot.lane.b32.xlu2 %v71_v2, %s84_s21  ;;  %s86_s26 = smov 64   ;;  %s49_s27 = smov 3  ;;  %v72_v5 = vld [vmem:[%s129_s0 + $0x2] ss:$8 sm:%s42_s24]  }
   0x6   :  { %v73_v6 = vld [vmem:[%s129_s0 + $0x1] ss:$8 sm:%s49_s27]   ;;  %s87_s3 = smov 32   ;;  %s88_s4 = smov 16  }
   0x7   :  { %s2_s5 = smov 3 }
   0x8   :  { %v3_v7 = vld [vmem:[%s129_s0] ss:$8 sm:%s2_s5]  }
   0x9   :  { %5 = vst.msk [vmem:[#allocation0] ss:$8 sm:$0x3] %vm4_vm0, %v3_v7  }
   0xa   :  { %16 = vrot.lane.b32.xlu0 %v68_v3, %s85_s25  ;;  %30 = vrot.lane.b32.xlu1 %v70_v4, %s86_s26 }
   0xd   :  { %44 = vrot.lane.b32.xlu2 %v72_v5, %s87_s3 }
  0x12   :  { %51 = vrot.lane.b32.xlu0 %v73_v6, %s88_s4 }
  0x5f   :  { %v38_v8 = vpop.permute.xlu2 %37  }
  0x67   :  { %v45_v9 = vpop.permute.xlu2 %44  }
  0x74   :  { %v10_v10 = vpop.permute.xlu0 %9   ;;  %v24_v11 = vpop.permute.xlu1 %23  }
  0x75   :  { %12 = vst.msk [vmem:[#allocation0] ss:$8 sm:$0x3] %vm11_vm1, %v10_v10  }
  0x7c   :  { %v17_v12 = vpop.permute.xlu0 %16   ;;  %v31_v13 = vpop.permute.xlu1 %30  }
  0x7d   :  { %19 = vst.msk [vmem:[#allocation0] ss:$8 sm:$0x3] %vm18_vm2, %v17_v12  }
  0x7e   :  { %26 = vst.msk [vmem:[#allocation0] ss:$8 sm:$0x3] %vm25_vm3, %v24_v11  }
  0x7f   :  { %33 = vst.msk [vmem:[#allocation0] ss:$8 sm:$0x3] %vm32_vm4, %v31_v13  }
  0x80   :  { %40 = vst.msk [vmem:[#allocation0] ss:$8 sm:$0x3] %vm39_vm5, %v38_v8  }
  0x81   :  { %47 = vst.msk [vmem:[#allocation0] ss:$8 sm:$0x3] %vm46_vm6, %v45_v9  }
  0x84   :  { %v52_v14 = vpop.permute.xlu0 %51  }
  0x85   :  { %54 = vst.msk [vmem:[#allocation0] ss:$8 sm:$0x3] %vm53_vm7, %v52_v14  }
  0x8c   :  { %v57_v15 = vld [vmem:[#allocation0] sm:$0x1]  ;;  %v62_v16 = vld [vmem:[#allocation0 + $0x8] sm:$0x1] }
  0x8d   :  { %60 = vst [vmem:[%s130_s1] sm:$0x1] %v57_v15 }
  0x8e   :  { %74 = vst [vmem:[%s130_s1 + $0x1] sm:$0x1] %v62_v16 }

// kernel: output_block_forward.1
= control target key start
LH: loop header
LB: loop body
LE: loop exit
PB: predicated region body
PF: predicated region fallthrough
CT: control target
= control target key end

     0   :  { %s1915_s30 = smov 0   ;;  %s2261_s0 = inlined_call_operand.vmem [shape: f32[2,4,256], index: 0, kind: input, shape index: {}]   ;;  %s2262_s1 = inlined_call_operand.vmem [shape: f32[9,4,4], index: 1, kind: input, shape index: {}]   ;;  %s2263_s2 = inlined_call_operand.vmem [shape: f32[4,1], index: 2, kind: input, shape index: {}]   ;;  %s2264_s3 = inlined_call_operand.vmem [shape: f32[4,1], index: 3, kind: input, shape index: {}]   ;;  %s2265_s4 = inlined_call_operand.vmem [shape: f32[9,8,4], index: 4, kind: input, shape index: {}]   ;;  %s2266_s5 = inlined_call_operand.vmem [shape: f32[8,1], index: 5, kind: input, shape index: {}]   ;;  %s2267_s6 = inlined_call_operand.vmem [shape: f32[8,1], index: 6, kind: input, shape index: {}]   ;;  %s2268_s7 = inlined_call_operand.vmem [shape: f32[1,256], index: 7, kind: input, shape index: {}]   ;;  %s2269_s8 = inlined_call_operand.vmem [shape: f32[1,256], index: 8, kind: input, shape index: {}]   ;;  %s2270_s9 = inlined_call_operand.vmem [shape: f32[2,8,256], index: 9, kind: output, shape index: {}]  }
   0x1 LB: > { %s1726_s10 = sadd.s32 4294967295, %s1853_s30   ;;  %p1730_p0 = scmp.ge.s32.totalorder %s1853_s30, 1  ;;  %s1853_s30 = sphi %s1915_s30, %s19_s30  }
   0x2   : > { %p287_p1 = scmp.lt.s32.totalorder %s1853_s30, 3 }
   0x4   : > { %p288_p2 = pnand %p1730_p0, %p287_p1 }
   0x5   : > { %s1856_s15 = smov (!%p288_p2), 111   ;;  %s1857_s16 = smov (!%p288_p2), 127  }
   0x6   : > { %291 = sbr.rel (%p288_p2) target bundleno = 797 (0x31d), region = 56  ;;  %s1858_s17 = smov (!%p288_p2), 15  }
   0x7   : > { %s1859_s18 = smov (!%p288_p2), 113   ;;  %s1860_s19 = smov (!%p288_p2), 1  }
   0x8   : > { %s1861_s20 = smov (!%p288_p2), 17   ;;  %p323_p3 = scmp.lt.s32.totalorder (!%p288_p2), %s1726_s10, 1 }
   0x9   : > { %s1862_s25 = smov (!%p288_p2), 16   ;;  %s1863_s26 = smov (!%p288_p2), 112  }
   0xb   : > { %v333_v0 = vld [vmem:[%s2268_s7] sm:$0x3]  ;;  %vm345_vm0 = vcmask 1043456   ;;  %v1855_v6 = vmov 0.0   ;;  %s2272_s10 = smov (!%p323_p3, %s1726_s10), 1  ;;  %vm350_vm1 = vcmask 908288  }
   0xc   : > { %v334_v1 = vld [vmem:[%s2269_s8] sm:$0x3]  ;;  %v342_v2 = vperm.slane %v333_v0, 0  ;;  %v343_v3 = vperm.slane %v333_v0, 1  ;;  %335 = vst [vmem:[#allocation2] sm:$0xf] %v1855_v6 }
   0xd   : > { %v492_v5 = vperm.slane %v334_v1, 1  ;;  %1028 = vst [vmem:[#allocation3] sm:$0xf] %v1855_v6  ;;  %v491_v8 = vperm.slane %v334_v1, 0  ;;  %s1825_s21 = sshll.u32 %s2272_s10, 3  ;;  %vm498_vm2 = vcmask 924672  }
   0xe   : > { %v344_v4 = vrot.slane %v343_v3, 4  ;;  %336 = vst [vmem:[#allocation2 + $0xc] sm:$0xf] %v1855_v6  ;;  %s327_s24 = scalar_lea.vmem %s2261_s0, %s1825_s21  ;;  %vm577_vm3 = vcmask 1039360   ;;  %vm599_vm4 = vcmask 7168   ;;  %vm520_vm5 = vcmask 121856  }
   0xf   : > { %1029 = vst [vmem:[#allocation3 + $0xc] sm:$0xf] %v1855_v6  ;;  %v493_v9 = vrot.slane %v492_v5, 4  ;;  %v1947_v11 = vld [vmem:[%s327_s24] sm:$0xff]  ;;  %vm438_vm6 = vcmask 138240   ;;  %vm373_vm7 = vcmask 130048  }
  0x10   : > { %v346_v7 = vsel %vm345_vm0, %v342_v2, %v344_v4  ;;  %338 = vst [vmem:[#allocation2 + $0x4] sm:$0xff] %v1947_v11  ;;  %vm376_vm8 = vcmask 31744   ;;  %vm879_vm9 = vcmask 916480  }
  0x11   : > { %347 = vrot.lane.b32.xlu0 %v346_v7, %s1856_s15  ;;  %574 = vrot.lane.b32.xlu1 %v346_v7, %s1857_s16  ;;  %v494_v10 = vsel %vm345_vm0, %v491_v8, %v493_v9 }
  0x12   : > { %786 = vrot.lane.b32.xlu2 %v346_v7, %s1858_s17 }
  0x15   : > { %v708_v41 = vld [vmem:[#allocation2 + $0xc] sm:$0xf] }
  0x16   : > { %v785_v48 = vld [vmem:[#allocation2 + $0xc] sm:$0xf] }
  0x17   : > { %v339_v12 = vld [vmem:[#allocation2] sm:$0xff]  ;;  %v340_v13 = vld [vmem:[#allocation2 + $0x8] sm:$0xf]  ;;  %v862_v57 = vld [vmem:[#allocation2 + $0xc] sm:$0xf] }
  0x18   : > { %361 = vst [vmem:[#allocation1] ss:$2 sm:$0xff] %v339_v12  ;;  %v489_v23 = vld [vmem:[#allocation2 + $0x8] sm:$0xf]  ;;  %v932_v63 = vld [vmem:[#allocation2 + $0xc] sm:$0xf] }
  0x19   : > { %495 = vrot.lane.b32.xlu0 %v494_v10, %s1859_s18  ;;  %709 = vrot.lane.b32.xlu1 %v494_v10, %s1860_s19  ;;  %363 = vst [vmem:[#allocation1 + $0x10] ss:$2 sm:$0xff] %v340_v13  ;;  %v573_v33 = vld [vmem:[#allocation2 + $0x8] sm:$0xf] }
  0x1a   : > { %933 = vrot.lane.b32.xlu2 %v494_v10, %s1861_s20 }
  0x1f   : > { %v365_v14 = vld.sshfl [vmem:[#allocation1 + $0x8] sm:$0xff pattern:$0x75316420]  ;;  %v364_v16 = vld.sshfl [vmem:[#allocation1] sm:$0xff pattern:$0x75316420] }
  0x20   : > { %v366_v15 = vld.sshfl [vmem:[#allocation1 + $0x10] sm:$0xff pattern:$0x75316420] }
  0x21   : > { %369 = vrot.lane.b32.xlu0 %v365_v14, %s1862_s25  ;;  %371 = vrot.lane.b32.xlu1 %v366_v15, %s1862_s25 }
  0x29   : > { %367 = vrot.lane.b32.xlu1 %v364_v16, %s1862_s25 }
  0x6c   : > { %v787_v47 = vpop.permute.xlu2 %786 }
  0x6d   : > { %v1993_v50 = vrot.slane %v787_v47, 4 }
  0x6f   : > { %v793_v51 = vmul.f32 %v1993_v50, %v785_v48  ;;  %v2006_v56 = vsel %vm520_vm5, %v1993_v50, %v787_v47  ;;  %v1008_v47 = vld [vmem:[%s2263_s2] sm:$0xf] }
  0x70   : > { %v792_v58 = vmul.f32 %v2006_v56, %v1947_v11  ;;  %v1018_v48 = vld [vmem:[%s2264_s3] sm:$0xf] }
  0x74   : > { %v934_v62 = vpop.permute.xlu2 %933 }
  0x75   : > { %v2013_v0 = vrot.slane %v934_v62, 4 }
  0x77   : > { %v940_v1 = vmul.f32 %v2013_v0, %v932_v63  ;;  %v2021_v5 = vsel %vm438_vm6, %v2013_v0, %v934_v62 }
  0x78   : > { %v939_v6 = vmul.f32 %v2021_v5, %v1947_v11 }
  0x83   : > { %v348_v17 = vpop.permute.xlu0 %347  ;;  %v575_v25 = vpop.permute.xlu1 %574 }
  0x84   : > { %v1953_v18 = vrot.slane %v348_v17, 4  ;;  %v1969_v30 = vrot.slane %v575_v25, 4 }
  0x86   : > { %v1957_v19 = vsel %vm350_vm1, %v1953_v18, %v348_v17  ;;  %v355_v20 = vmul.f32 %v1953_v18, %v340_v13  ;;  %v1975_v34 = vsel %vm577_vm3, %v1969_v30, %v575_v25  ;;  %v582_v35 = vmul.f32 %v1969_v30, %v573_v33 }
  0x87   : > { %v354_v21 = vmul.f32 %v1957_v19, %v339_v12  ;;  %v581_v36 = vmul.f32 %v1975_v34, %v339_v12 }
  0x88   : > { %428 = vst [vmem:[#allocation1 + $0x10] ss:$2 sm:$0xff] %v355_v20 }
  0x89   : > { %426 = vst [vmem:[#allocation1] ss:$2 sm:$0xff] %v354_v21 }
  0x8b   : > { %v496_v22 = vpop.permute.xlu0 %495  ;;  %v710_v40 = vpop.permute.xlu1 %709 }
  0x8c   : > { %v1961_v24 = vrot.slane %v496_v22, 4  ;;  %v1982_v42 = vrot.slane %v710_v40, 4 }
  0x8e   : > { %v1965_v26 = vsel %vm498_vm2, %v1961_v24, %v496_v22  ;;  %v503_v27 = vmul.f32 %v1961_v24, %v489_v23  ;;  %v716_v43 = vmul.f32 %v1982_v42, %v708_v41  ;;  %v1991_v49 = vsel %vm599_vm4, %v1982_v42, %v710_v40  ;;  %v1735_v22 = vld [vmem:[%s2262_s1 + $0x4] sm:$0xf]  ;;  %v356_v23 = vld [vmem:[%s2262_s1] sm:$0xf] }
  0x8f   : > { %v431_v28 = vld.sshfl [vmem:[#allocation1 + $0x10] sm:$0xff pattern:$0x75316420]  ;;  %v502_v29 = vmul.f32 %v1965_v26, %v339_v12  ;;  %v715_v52 = vmul.f32 %v1991_v49, %v1947_v11 }
  0x90   : > { %v429_v31 = vld.sshfl [vmem:[#allocation1] sm:$0xff pattern:$0x75316420]  ;;  %v430_v32 = vld.sshfl [vmem:[#allocation1 + $0x8] sm:$0xff pattern:$0x75316420]  ;;  %436 = vrot.lane.b32.xlu0 %v431_v28, %s1861_s20 }
  0x91   : > { %508 = vst [vmem:[#allocation1] ss:$2 sm:$0xff] %v502_v29  ;;  %434 = vrot.lane.b32.xlu2 %v430_v32, %s1861_s20  ;;  %v1749_v32 = vld [vmem:[%s2262_s1 + $0xc] sm:$0xf] }
  0x92   : > { %510 = vst [vmem:[#allocation1 + $0x10] ss:$2 sm:$0xff] %v503_v27 }
  0x93   : > { %v372_v13 = vpop.permute.xlu1 %371  ;;  %v370_v14 = vpop.permute.xlu0 %369 }
  0x94   : > { %v375_v16 = vsel %vm373_vm7, %v370_v14, %v372_v13 }
  0x95   : > { %1738 = vmatpush.msk.msra.mxu1 %vm345_vm0, %v375_v16 }
  0x96   : > { %1739 = vmatmul.msk.f32.vlgmr.msra.gmra.mxu1 %vm376_vm8, %v1735_v22 }
  0x98   : > { %v511_v37 = vld.sshfl [vmem:[#allocation1] sm:$0xff pattern:$0x75316420]  ;;  %v512_v38 = vld.sshfl [vmem:[#allocation1 + $0x8] sm:$0xff pattern:$0x75316420] }
  0x99   : > { %v513_v39 = vld.sshfl [vmem:[#allocation1 + $0x10] sm:$0xff pattern:$0x75316420]  ;;  %587 = vst [vmem:[#allocation1] ss:$2 sm:$0xff] %v581_v36  ;;  %432 = vrot.lane.b32.xlu2 %v429_v31, %s1861_s20  ;;  %516 = vrot.lane.b32.xlu0 %v512_v38, %s1858_s17 }
  0x9a   : > { %589 = vst [vmem:[#allocation1 + $0x10] ss:$2 sm:$0xff] %v582_v35  ;;  %518 = vrot.lane.b32.xlu1 %v513_v39, %s1858_s17  ;;  %v1744_v36 = vld [vmem:[%s2262_s1 + $0x8] sm:$0xf] }
  0xa0   : > { %v591_v44 = vld.sshfl [vmem:[#allocation1 + $0x8] sm:$0xff pattern:$0x75316420]  ;;  %v590_v45 = vld.sshfl [vmem:[#allocation1] sm:$0xff pattern:$0x75316420] }
  0xa1   : > { %v592_v46 = vld.sshfl [vmem:[#allocation1 + $0x10] sm:$0xff pattern:$0x75316420]  ;;  %595 = vrot.lane.b32.xlu2 %v591_v44, %s1860_s19  ;;  %655 = vst [vmem:[#allocation1] ss:$2 sm:$0xff] %v1947_v11 }
  0xa2   : > { %723 = vst [vmem:[#allocation1 + $0x10] ss:$2 sm:$0xff] %v716_v43  ;;  %514 = vrot.lane.b32.xlu1 %v511_v37, %s1858_s17  ;;  %597 = vrot.lane.b32.xlu0 %v592_v46, %s1860_s19  ;;  %v1754_v44 = vld [vmem:[%s2262_s1 + $0x10] sm:$0xf] }
  0xa8   : > { %v1998_v53 = vld.sshfl [vmem:[#allocation1] sm:$0xff pattern:$0x75316420]  ;;  %v2000_v54 = vld.sshfl [vmem:[#allocation1 + $0x8] sm:$0xff pattern:$0x75316420] }
  0xa9   : > { %v726_v55 = vld.sshfl [vmem:[#allocation1 + $0x10] sm:$0xff pattern:$0x75316420]  ;;  %593 = vrot.lane.b32.xlu2 %v590_v45, %s1860_s19  ;;  %721 = vst [vmem:[#allocation1] ss:$2 sm:$0xff] %v715_v52 }
  0xaa   : > { %800 = vst [vmem:[#allocation1 + $0x10] ss:$2 sm:$0xff] %v793_v51  ;;  %731 = vrot.lane.b32.xlu1 %v726_v55, %s1857_s16  ;;  %v1864_v51 = vmov 0  }
  0xab   : > { %1845 = vset.pattern.permute.xlu0 %v1864_v51  ;;  %1846 = vset.pattern.permute.xlu1 %v1864_v51 }
  0xb0   : > { %v725_v59 = vld.sshfl [vmem:[#allocation1 + $0x8] sm:$0xff pattern:$0x75316420]  ;;  %v724_v60 = vld.sshfl [vmem:[#allocation1] sm:$0xff pattern:$0x75316420] }
  0xb1   : > { %v803_v61 = vld.sshfl [vmem:[#allocation1 + $0x10] sm:$0xff pattern:$0x75316420]  ;;  %729 = vrot.lane.b32.xlu0 %v725_v59, %s1857_s16  ;;  %727 = vrot.lane.b32.xlu2 %v724_v60, %s1857_s16  ;;  %798 = vst [vmem:[#allocation1] ss:$2 sm:$0xff] %v792_v58 }
  0xb2   : > { %808 = vrot.lane.b32.xlu1 %v803_v61, %s1859_s18  ;;  %869 = vst [vmem:[#allocation1 + $0x10] ss:$2 sm:$0xff] %v862_v57  ;;  %v1769_v60 = vld [vmem:[%s2262_s1 + $0x1c] sm:$0xf] }
  0xb8   : > { %v801_v2 = vld.sshfl [vmem:[#allocation1] sm:$0xff pattern:$0x75316420]  ;;  %v802_v3 = vld.sshfl [vmem:[#allocation1 + $0x8] sm:$0xff pattern:$0x75316420] }
  0xb9   : > { %v872_v4 = vld.sshfl [vmem:[#allocation1 + $0x10] sm:$0xff pattern:$0x75316420]  ;;  %867 = vst [vmem:[#allocation1] ss:$2 sm:$0xff] %v1947_v11  ;;  %v368_v11 = vpop.permute.xlu1 %367 }
  0xba   : > { %947 = vst [vmem:[#allocation1 + $0x10] ss:$2 sm:$0xff] %v940_v1  ;;  %877 = vrot.lane.b32.xlu0 %v872_v4, %s1863_s26  ;;  %804 = vrot.lane.b32.xlu1 %v801_v2, %s1859_s18  ;;  %v374_v15 = vsel %vm373_vm7, %v368_v11, %v370_v14  ;;  %v1764_v2 = vld [vmem:[%s2262_s1 + $0x18] sm:$0xf] }
  0xbb   : > { %1736 = vmatpush.msk.msra.mxu0 %vm345_vm0, %v374_v15 }
  0xbc   : > { %1737 = vmatmul.msk.f32.vlgmr.msra.gmra.mxu0 %vm376_vm8, %v1735_v22 }
  0xc0   : > { %v871_v7 = vld.sshfl [vmem:[#allocation1 + $0x8] sm:$0xff pattern:$0x75316420]  ;;  %v870_v8 = vld.sshfl [vmem:[#allocation1] sm:$0xff pattern:$0x75316420] }
  0xc1   : > { %875 = vrot.lane.b32.xlu2 %v871_v7, %s1863_s26  ;;  %v950_v9 = vld.sshfl [vmem:[#allocation1 + $0x10] sm:$0xff pattern:$0x75316420]  ;;  %945 = vst [vmem:[#allocation1] ss:$2 sm:$0xff] %v939_v6 }
  0xc2   : > { %806 = vrot.lane.b32.xlu0 %v802_v3, %s1859_s18  ;;  %955 = vrot.lane.b32.xlu1 %v950_v9, %s1856_s15  ;;  %v1774_v9 = vld [vmem:[%s2262_s1 + $0x20] sm:$0xf] }
  0xc8   : > { %v949_v10 = vld.sshfl [vmem:[#allocation1 + $0x8] sm:$0xff pattern:$0x75316420]  ;;  %v948_v12 = vld.sshfl [vmem:[#allocation1] sm:$0xff pattern:$0x75316420] }
  0xc9   : > { %873 = vrot.lane.b32.xlu2 %v870_v8, %s1863_s26 }
  0xca   : > { %953 = vrot.lane.b32.xlu0 %v949_v10, %s1856_s15  ;;  %1021 = vperm.xlu1 %1846, %v1018_v48  }
  0xd1   : > { %951 = vrot.lane.b32.xlu2 %v948_v12, %s1856_s15 }
  0xd2   : > { %1011 = vperm.xlu0 %1845, %v1008_v47  }
  0xeb   : > { %v435_v17 = vpop.permute.xlu2 %434 }
  0xf3   : > { %v433_v20 = vpop.permute.xlu2 %432 }
  0xf4   : > { %v439_v21 = vsel %vm438_vm6, %v433_v20, %v435_v17 }
  0xf5   : > { %1740 = vmatpush.msk.msra.mxu2 %vm345_vm0, %v439_v21 }
  0xf6   : > { %1741 = vmatmul.msk.f32.vlgmr.msra.gmra.mxu2 %vm376_vm8, %v356_v23 }
  0xfb   : > { %v596_v25 = vpop.permute.xlu2 %595 }
 0x102   : > { %v437_v27 = vpop.permute.xlu0 %436 }
 0x103   : > { %v594_v28 = vpop.permute.xlu2 %593  ;;  %v440_v29 = vsel %vm438_vm6, %v435_v17, %v437_v27 }
 0x104   : > { %1742 = vmatpush.msk.msra.mxu3 %vm345_vm0, %v440_v29  ;;  %v600_v31 = vsel %vm599_vm4, %v594_v28, %v596_v25 }
 0x105   : > { %1750 = vmatpush.msk.msrb.mxu2 %vm345_vm0, %v600_v31  ;;  %1743 = vmatmul.msk.f32.vlgmr.msra.gmra.mxu3 %vm376_vm8, %v356_v23 }
 0x106   : > { %1751 = vmatmul.msk.f32.vlgmr.msrb.gmra.mxu2 %vm376_vm8, %v1749_v32 }
 0x10b   : > { %v517_v33 = vpop.permute.xlu0 %516  ;;  %v728_v38 = vpop.permute.xlu2 %727 }
 0x10c   : > { %v519_v35 = vpop.permute.xlu1 %518 }
 0x10d   : > { %v522_v37 = vsel %vm520_vm5, %v517_v33, %v519_v35 }
 0x10e   : > { %1747 = vmatpush.msk.msrb.mxu1 %vm345_vm0, %v522_v37 }
 0x10f   : > { %1748 = vmatmul.msk.f32.vlgmr.msrb.gmra.mxu1 %vm376_vm8, %v1744_v36 }
 0x110   : > { %1757 = vmatpush.msk.msra.mxu1 %vm345_vm0, %v2000_v54  ;;  %v1759_v54 = vld [vmem:[%s2262_s1 + $0x14] sm:$0xf] }
 0x113   : > { %v421_v13 = vpop.f32.mrf.mxu1 }
 0x114   : > { %v515_v39 = vpop.permute.xlu1 %514  ;;  %v598_v40 = vpop.permute.xlu0 %597 }
 0x115   : > { %v521_v41 = vsel %vm520_vm5, %v515_v39, %v517_v33  ;;  %v601_v43 = vsel %vm599_vm4, %v596_v25, %v598_v40 }
 0x116   : > { %1745 = vmatpush.msk.msrb.mxu0 %vm345_vm0, %v521_v41  ;;  %1752 = vmatpush.msk.msrb.mxu3 %vm345_vm0, %v601_v43 }
 0x117   : > { %1753 = vmatmul.msk.f32.vlgmr.msrb.gmra.mxu3 %vm376_vm8, %v1749_v32  ;;  %1746 = vmatmul.msk.f32.vlgmr.msrb.gmra.mxu0 %vm376_vm8, %v1744_v36 }
 0x118   : > { %1758 = vmatmul.msk.f32.vlgmr.msra.gmra.mxu1 %vm376_vm8, %v1754_v44  ;;  %1755 = vmatpush.msk.msra.mxu0 %vm345_vm0, %v1998_v53 }
 0x11b   : > { %v876_v45 = vpop.permute.xlu2 %875 }
 0x11c   : > { %v732_v46 = vpop.permute.xlu1 %731 }
 0x11f   : > { %1756 = vmatmul.msk.f32.vlgmr.msra.gmra.mxu0 %vm376_vm8, %v1754_v44 }
 0x123   : > { %v730_v52 = vpop.permute.xlu0 %729  ;;  %v874_v53 = vpop.permute.xlu2 %873 }
 0x124   : > { %v733_v55 = vsel %vm577_vm3, %v728_v38, %v730_v52  ;;  %v734_v57 = vsel %vm577_vm3, %v730_v52, %v732_v46  ;;  %v880_v58 = vsel %vm879_vm9, %v874_v53, %v876_v45  ;;  %v809_v59 = vpop.permute.xlu1 %808 }
 0x125   : > { %1760 = vmatpush.msk.msra.mxu2 %vm345_vm0, %v733_v55  ;;  %1762 = vmatpush.msk.msra.mxu3 %vm345_vm0, %v734_v57 }
 0x126   : > { %1761 = vmatmul.msk.f32.vlgmr.msra.gmra.mxu2 %vm376_vm8, %v1759_v54  ;;  %1763 = vmatmul.msk.f32.vlgmr.msra.gmra.mxu3 %vm376_vm8, %v1759_v54 }
 0x127   : > { %1770 = vmatpush.msk.msrb.mxu2 %vm345_vm0, %v880_v58 }
 0x12b   : > { %v952_v7 = vpop.permute.xlu2 %951 }
 0x12c   : > { %v878_v61 = vpop.permute.xlu0 %877  ;;  %v805_v63 = vpop.permute.xlu1 %804 }
 0x12d   : > { %v881_v62 = vsel %vm879_vm9, %v876_v45, %v878_v61 }
 0x12e   : > { %1772 = vmatpush.msk.msrb.mxu3 %vm345_vm0, %v881_v62  ;;  %1771 = vmatmul.msk.f32.vlgmr.msrb.gmra.mxu2 %vm376_vm8, %v1769_v60 }
 0x12f   : > { %1773 = vmatmul.msk.f32.vlgmr.msrb.gmra.mxu3 %vm376_vm8, %v1769_v60 }
 0x134   : > { %v807_v1 = vpop.permute.xlu0 %806  ;;  %v956_v6 = vpop.permute.xlu1 %955 }
 0x135   : > { %v810_v3 = vsel %vm498_vm2, %v805_v63, %v807_v1  ;;  %v811_v4 = vsel %vm498_vm2, %v807_v1, %v809_v59 }
 0x136   : > { %1765 = vmatpush.msk.msrb.mxu0 %vm345_vm0, %v810_v3  ;;  %1767 = vmatpush.msk.msrb.mxu1 %vm345_vm0, %v811_v4 }
 0x137   : > { %1766 = vmatmul.msk.f32.vlgmr.msrb.gmra.mxu0 %vm376_vm8, %v1764_v2  ;;  %1768 = vmatmul.msk.f32.vlgmr.msrb.gmra.mxu1 %vm376_vm8, %v1764_v2 }
 0x139   : > { %v401_v11 = vpop.f32.mrf.mxu0 }
 0x13c   : > { %v954_v8 = vpop.permute.xlu0 %953  ;;  %v1022_v57 = vpop.permute.xlu1 %1021 }
 0x13d   : > { %v957_v10 = vsel %vm350_vm1, %v952_v7, %v954_v8  ;;  %v958_v12 = vsel %vm350_vm1, %v954_v8, %v956_v6 }
 0x13e   : > { %1775 = vmatpush.msk.msra.mxu0 %vm345_vm0, %v957_v10  ;;  %1777 = vmatpush.msk.msra.mxu1 %vm345_vm0, %v958_v12 }
 0x13f   : > { %1776 = vmatmul.msk.f32.vlgmr.msra.gmra.mxu0 %vm376_vm8, %v1774_v9  ;;  %1778 = vmatmul.msk.f32.vlgmr.msra.gmra.mxu1 %vm376_vm8, %v1774_v9 }
 0x144   : > { %v1012_v51 = vpop.permute.xlu0 %1011 }
 0x179   : > { %v465_v14 = vpop.f32.mrf.mxu2 }
 0x17a   : > { %v466_v22 = vadd.f32 %v465_v14, %v401_v11 }
 0x188   : > { %v485_v15 = vpop.f32.mrf.mxu3 }
 0x189   : > { %v626_v20 = vpop.f32.mrf.mxu2  ;;  %v486_v21 = vadd.f32 %v485_v15, %v421_v13 }
 0x18c   : > { %v567_v16 = vpop.f32.mrf.mxu1 }
 0x18d   : > { %v571_v25 = vadd.f32 %v567_v16, %v486_v21  ;;  %v1368_v21 = vld [vmem:[#allocation3 + $0xc] sm:$0xf] }
 0x194   : > { %v547_v17 = vpop.f32.mrf.mxu0 }
 0x195   : > { %v570_v27 = vadd.f32 %v547_v17, %v466_v22  ;;  %v702_v28 = vpop.f32.mrf.mxu1  ;;  %v1370_v22 = vmul.f32 %v1368_v21, %v1982_v42 }
 0x197   : > { %v649_v32 = vadd.f32 %v626_v20, %v570_v27 }
 0x19a   : > { %v646_v23 = vpop.f32.mrf.mxu3 }
 0x19b   : > { %v650_v31 = vadd.f32 %v646_v23, %v571_v25 }
 0x19c   : > { %v682_v29 = vpop.f32.mrf.mxu0 }
 0x19d   : > { %v706_v36 = vadd.f32 %v702_v28, %v650_v31  ;;  %v705_v37 = vadd.f32 %v682_v29, %v649_v32  ;;  %v1510_v32 = vld [vmem:[#allocation3 + $0xc] sm:$0xf] }
 0x1a9   : > { %v759_v33 = vpop.f32.mrf.mxu2  ;;  %v779_v35 = vpop.f32.mrf.mxu3 }
 0x1aa   : > { %v782_v40 = vadd.f32 %v759_v33, %v705_v37  ;;  %v783_v41 = vadd.f32 %v779_v35, %v706_v36 }
 0x1b1   : > { %v906_v45 = vpop.f32.mrf.mxu2 }
 0x1b2   : > { %v926_v46 = vpop.f32.mrf.mxu3 }
 0x1b4   : > { %v836_v38 = vpop.f32.mrf.mxu0  ;;  %v856_v39 = vpop.f32.mrf.mxu1 }
 0x1b5   : > { %v859_v43 = vadd.f32 %v836_v38, %v782_v40  ;;  %v860_v44 = vadd.f32 %v856_v39, %v783_v41 }
 0x1b7   : > { %v929_v47 = vadd.f32 %v906_v45, %v859_v43  ;;  %v930_v48 = vadd.f32 %v926_v46, %v860_v44  ;;  %v1649_v46 = vld [vmem:[%s2266_s5] sm:$0xff] }
 0x1bc   : > { %v983_v52 = vpop.f32.mrf.mxu0  ;;  %v1003_v53 = vpop.f32.mrf.mxu1 }
 0x1bd   : > { %v1006_v54 = vadd.f32 %v983_v52, %v929_v47  ;;  %v1007_v55 = vadd.f32 %v1003_v53, %v930_v48  ;;  %v1779_v52 = vld [vmem:[%s2265_s4 + $0x8] sm:$0xff] }
 0x1bf   : > { %v1014_v58 = vadd.f32 %v1012_v51, %v1006_v54  ;;  %v1015_v59 = vadd.f32 %v1012_v51, %v1007_v55 }
 0x1c1   : > { %vm1017_vm10 = vcmp.gt.f32.partialorder %v1015_v59, 0.0  ;;  %v1024_v60 = vmul.f32 %v1022_v57, %v1014_v58  ;;  %v1025_v61 = vmul.f32 %v1022_v57, %v1015_v59  ;;  %vm1016_vm11 = vcmp.gt.f32.partialorder %v1014_v58, 0.0 }
 0x1c3   : > { %v1027_v62 = vsel %vm1017_vm10, %v1015_v59, %v1025_v61  ;;  %v1026_v1 = vsel %vm1016_vm11, %v1014_v58, %v1024_v60  ;;  %v1040_v58 = vld [vmem:[%s2265_s4] sm:$0xff] }
 0x1c4   : > { %v1032_v63 = vrot.slane %v1027_v62, 4 }
 0x1c6   : > { %v2119_v2 = vsel %vm345_vm0, %v1026_v1, %v1032_v63 }
 0x1c7   : > { %1035 = vst [vmem:[#allocation3 + $0x4] sm:$0xff] %v2119_v2  ;;  %v1369_v27 = vmul.f32 %v2119_v2, %v1991_v49  ;;  %v1440_v33 = vmul.f32 %v2119_v2, %v2006_v56  ;;  %v1580_v56 = vmul.f32 %v2119_v2, %v2021_v5  ;;  %v1659_v5 = vld [vmem:[%s2267_s6] sm:$0xff] }
 0x1ce   : > { %v1036_v3 = vld [vmem:[#allocation3] sm:$0xff]  ;;  %v1037_v4 = vld [vmem:[#allocation3 + $0x8] sm:$0xf] }
 0x1cf   : > { %1045 = vst [vmem:[#allocation1] ss:$2 sm:$0xff] %v1036_v3  ;;  %v1038_v6 = vmul.f32 %v1036_v3, %v1957_v19  ;;  %v1039_v7 = vmul.f32 %v1037_v4, %v1953_v18  ;;  %v1170_v12 = vld [vmem:[#allocation3 + $0x8] sm:$0xf]  ;;  %v1171_v13 = vmul.f32 %v1036_v3, %v1965_v26  ;;  %v1242_v16 = vmul.f32 %v1036_v3, %v1975_v34  ;;  %v1439_v34 = vld [vmem:[#allocation3 + $0xc] sm:$0xf] }
 0x1d0   : > { %1047 = vst [vmem:[#allocation1 + $0x10] ss:$2 sm:$0xff] %v1037_v4  ;;  %v1172_v11 = vmul.f32 %v1170_v12, %v1961_v24  ;;  %v1241_v19 = vld [vmem:[#allocation3 + $0x8] sm:$0xf]  ;;  %v1441_v28 = vmul.f32 %v1439_v34, %v1993_v50  ;;  %v1579_v50 = vld [vmem:[#allocation3 + $0xc] sm:$0xf] }
 0x1d1   : > { %v1243_v17 = vmul.f32 %v1241_v19, %v1969_v30  ;;  %v1581_v37 = vmul.f32 %v1579_v50, %v2013_v0  ;;  %v1788_v3 = vld [vmem:[%s2265_s4 + $0x10] sm:$0xff]  ;;  %v1798_v12 = vld [vmem:[%s2265_s4 + $0x20] sm:$0xff] }
 0x1d2   : > { %v1818_v34 = vld [vmem:[%s2265_s4 + $0x40] sm:$0xff] }
 0x1d6   : > { %v1049_v8 = vld.sshfl [vmem:[#allocation1 + $0x8] sm:$0xff pattern:$0x75316420]  ;;  %v1048_v9 = vld.sshfl [vmem:[#allocation1] sm:$0xff pattern:$0x75316420] }
 0x1d7   : > { %1053 = vrot.lane.b32.xlu1 %v1049_v8, %s1862_s25  ;;  %1051 = vrot.lane.b32.xlu2 %v1048_v9, %s1862_s25  ;;  %1108 = vst [vmem:[#allocation1] ss:$2 sm:$0xff] %v1038_v6  ;;  %v1050_v10 = vld.sshfl [vmem:[#allocation1 + $0x10] sm:$0xff pattern:$0x75316420]  ;;  %v1793_v8 = vld [vmem:[%s2265_s4 + $0x18] sm:$0xff] }
 0x1d8   : > { %1110 = vst [vmem:[#allocation1 + $0x10] ss:$2 sm:$0xff] %v1039_v7 }
 0x1de   : > { %v1112_v14 = vld.sshfl [vmem:[#allocation1 + $0x8] sm:$0xff pattern:$0x75316420]  ;;  %v1111_v15 = vld.sshfl [vmem:[#allocation1] sm:$0xff pattern:$0x75316420] }
 0x1df   : > { %1055 = vrot.lane.b32.xlu2 %v1050_v10, %s1862_s25  ;;  %1116 = vrot.lane.b32.xlu1 %v1112_v14, %s1861_s20  ;;  %1177 = vst [vmem:[#allocation1] ss:$2 sm:$0xff] %v1171_v13  ;;  %v1113_v18 = vld.sshfl [vmem:[#allocation1 + $0x10] sm:$0xff pattern:$0x75316420] }
 0x1e0   : > { %1114 = vrot.lane.b32.xlu0 %v1111_v15, %s1861_s20  ;;  %1179 = vst [vmem:[#allocation1 + $0x10] ss:$2 sm:$0xff] %v1172_v11  ;;  %v1803_v15 = vld [vmem:[%s2265_s4 + $0x28] sm:$0xff] }
 0x1e6   : > { %v1181_v20 = vld.sshfl [vmem:[#allocation1 + $0x8] sm:$0xff pattern:$0x75316420]  ;;  %v1180_v26 = vld.sshfl [vmem:[#allocation1] sm:$0xff pattern:$0x75316420] }
 0x1e7   : > { %1118 = vrot.lane.b32.xlu2 %v1113_v18, %s1861_s20  ;;  %1185 = vrot.lane.b32.xlu1 %v1181_v20, %s1858_s17  ;;  %1248 = vst [vmem:[#allocation1] ss:$2 sm:$0xff] %v1242_v16  ;;  %v1182_v24 = vld.sshfl [vmem:[#allocation1 + $0x10] sm:$0xff pattern:$0x75316420] }
 0x1e8   : > { %1183 = vrot.lane.b32.xlu0 %v1180_v26, %s1858_s17  ;;  %1250 = vst [vmem:[#allocation1 + $0x10] ss:$2 sm:$0xff] %v1243_v17  ;;  %v1808_v26 = vld [vmem:[%s2265_s4 + $0x30] sm:$0xff] }
 0x1ee   : > { %v1252_v23 = vld.sshfl [vmem:[#allocation1 + $0x8] sm:$0xff pattern:$0x75316420]  ;;  %v1251_v25 = vld.sshfl [vmem:[#allocation1] sm:$0xff pattern:$0x75316420] }
 0x1ef   : > { %1187 = vrot.lane.b32.xlu2 %v1182_v24, %s1858_s17  ;;  %1256 = vrot.lane.b32.xlu1 %v1252_v23, %s1860_s19  ;;  %1315 = vst [vmem:[#allocation1] ss:$2 sm:$0xff] %v2119_v2  ;;  %v1253_v30 = vld.sshfl [vmem:[#allocation1 + $0x10] sm:$0xff pattern:$0x75316420] }
 0x1f0   : > { %1254 = vrot.lane.b32.xlu0 %v1251_v25, %s1860_s19  ;;  %1377 = vst [vmem:[#allocation1 + $0x10] ss:$2 sm:$0xff] %v1370_v22 }
 0x1f6   : > { %v2144_v29 = vld.sshfl [vmem:[#allocation1] sm:$0xff pattern:$0x75316420]  ;;  %v2146_v42 = vld.sshfl [vmem:[#allocation1 + $0x8] sm:$0xff pattern:$0x75316420] }
 0x1f7   : > { %1258 = vrot.lane.b32.xlu2 %v1253_v30, %s1860_s19  ;;  %v1380_v31 = vld.sshfl [vmem:[#allocation1 + $0x10] sm:$0xff pattern:$0x75316420]  ;;  %1375 = vst [vmem:[#allocation1] ss:$2 sm:$0xff] %v1369_v27  ;;  %s1826_s19 = sshll.u32 %s2272_s10, 4 }
 0x1f8   : > { %1448 = vst [vmem:[#allocation1 + $0x10] ss:$2 sm:$0xff] %v1441_v28  ;;  %s332_s25 = scalar_lea.vmem %s2270_s9, %s1826_s19 }
 0x1fe   : > { %v1379_v35 = vld.sshfl [vmem:[#allocation1 + $0x8] sm:$0xff pattern:$0x75316420]  ;;  %v1378_v36 = vld.sshfl [vmem:[#allocation1] sm:$0xff pattern:$0x75316420] }
 0x1ff   : > { %1385 = vrot.lane.b32.xlu2 %v1380_v31, %s1857_s16  ;;  %1383 = vrot.lane.b32.xlu1 %v1379_v35, %s1857_s16  ;;  %1446 = vst [vmem:[#allocation1] ss:$2 sm:$0xff] %v1440_v33  ;;  %v1451_v49 = vld.sshfl [vmem:[#allocation1 + $0x10] sm:$0xff pattern:$0x75316420] }
 0x200   : > { %1381 = vrot.lane.b32.xlu0 %v1378_v36, %s1857_s16  ;;  %1517 = vst [vmem:[#allocation1 + $0x10] ss:$2 sm:$0xff] %v1510_v32  ;;  %v1813_v32 = vld [vmem:[%s2265_s4 + $0x38] sm:$0xff] }
 0x206   : > { %v1450_v38 = vld.sshfl [vmem:[#allocation1 + $0x8] sm:$0xff pattern:$0x75316420]  ;;  %v1449_v39 = vld.sshfl [vmem:[#allocation1] sm:$0xff pattern:$0x75316420] }
 0x207   : > { %v1520_v40 = vld.sshfl [vmem:[#allocation1 + $0x10] sm:$0xff pattern:$0x75316420]  ;;  %1456 = vrot.lane.b32.xlu2 %v1451_v49, %s1859_s18  ;;  %1454 = vrot.lane.b32.xlu1 %v1450_v38, %s1859_s18  ;;  %1515 = vst [vmem:[#allocation1] ss:$2 sm:$0xff] %v2119_v2 }
 0x208   : > { %1588 = vst [vmem:[#allocation1 + $0x10] ss:$2 sm:$0xff] %v1581_v37  ;;  %1452 = vrot.lane.b32.xlu0 %v1449_v39, %s1859_s18 }
 0x20e   : > { %v1518_v41 = vld.sshfl [vmem:[#allocation1] sm:$0xff pattern:$0x75316420]  ;;  %v1519_v43 = vld.sshfl [vmem:[#allocation1 + $0x8] sm:$0xff pattern:$0x75316420] }
 0x20f   : > { %v1591_v44 = vld.sshfl [vmem:[#allocation1 + $0x10] sm:$0xff pattern:$0x75316420]  ;;  %1586 = vst [vmem:[#allocation1] ss:$2 sm:$0xff] %v1580_v56 }
 0x210   : > { %1596 = vrot.lane.b32.xlu2 %v1591_v44, %s1856_s15 }
 0x216   : > { %v1590_v0 = vld.sshfl [vmem:[#allocation1 + $0x8] sm:$0xff pattern:$0x75316420]  ;;  %v1589_v45 = vld.sshfl [vmem:[#allocation1] sm:$0xff pattern:$0x75316420] }
 0x217   : > { %1594 = vrot.lane.b32.xlu1 %v1590_v0, %s1856_s15  ;;  %1592 = vrot.lane.b32.xlu0 %v1589_v45, %s1856_s15 }
 0x218   : > { %1525 = vrot.lane.b32.xlu2 %v1520_v40, %s1863_s26 }
 0x21f   : > { %1523 = vrot.lane.b32.xlu1 %v1519_v43, %s1863_s26  ;;  %1521 = vrot.lane.b32.xlu0 %v1518_v41, %s1863_s26 }
 0x227   : > { %1662 = vperm.xlu1 %1846, %v1659_v5   ;;  %1652 = vperm.xlu0 %1845, %v1649_v46  }
 0x231   : > { %v1052_v47 = vpop.permute.xlu2 %1051 }
 0x239   : > { %v1056_v48 = vpop.permute.xlu2 %1055 }
 0x241   : > { %v1119_v55 = vpop.permute.xlu2 %1118 }
 0x249   : > { %v1054_v51 = vpop.permute.xlu1 %1053  ;;  %v1188_v62 = vpop.permute.xlu2 %1187 }
 0x24a   : > { %v1057_v53 = vsel %vm373_vm7, %v1052_v47, %v1054_v51  ;;  %v1058_v54 = vsel %vm373_vm7, %v1054_v51, %v1056_v48 }
 0x24b   : > { %1780 = vmatpush.msk.msra.mxu2 %vm345_vm0, %v1057_v53  ;;  %1782 = vmatpush.msk.msra.mxu3 %vm345_vm0, %v1058_v54 }
 0x24c   : > { %1781 = vmatmul.msk.f32.vlgmr.msra.gmra.mxu2 %vm376_vm8, %v1779_v52  ;;  %1783 = vmatmul.msk.f32.vlgmr.msra.gmra.mxu3 %vm376_vm8, %v1779_v52 }
 0x251   : > { %v1117_v57 = vpop.permute.xlu1 %1116  ;;  %v1259_v6 = vpop.permute.xlu2 %1258 }
 0x252   : > { %v1121_v59 = vsel %vm438_vm6, %v1117_v57, %v1119_v55  ;;  %v1115_v60 = vpop.permute.xlu0 %1114 }
 0x253   : > { %v1120_v61 = vsel %vm438_vm6, %v1115_v60, %v1117_v57  ;;  %1786 = vmatpush.msk.msrb.mxu1 %vm345_vm0, %v1121_v59 }
 0x254   : > { %1784 = vmatpush.msk.msrb.mxu0 %vm345_vm0, %v1120_v61  ;;  %1787 = vmatmul.msk.f32.vlgmr.msrb.gmra.mxu1 %vm376_vm8, %v1040_v58 }
 0x255   : > { %1785 = vmatmul.msk.f32.vlgmr.msrb.gmra.mxu0 %vm376_vm8, %v1040_v58 }
 0x259   : > { %v1186_v63 = vpop.permute.xlu1 %1185  ;;  %v1386_v11 = vpop.permute.xlu2 %1385 }
 0x25a   : > { %v1190_v1 = vsel %vm520_vm5, %v1186_v63, %v1188_v62  ;;  %v1184_v2 = vpop.permute.xlu0 %1183 }
 0x25b   : > { %v1189_v4 = vsel %vm520_vm5, %v1184_v2, %v1186_v63  ;;  %1791 = vmatpush.msk.msrb.mxu3 %vm345_vm0, %v1190_v1 }
 0x25c   : > { %1789 = vmatpush.msk.msrb.mxu2 %vm345_vm0, %v1189_v4  ;;  %1792 = vmatmul.msk.f32.vlgmr.msrb.gmra.mxu3 %vm376_vm8, %v1788_v3 }
 0x25d   : > { %1801 = vmatpush.msk.msra.mxu3 %vm345_vm0, %v2146_v42  ;;  %1790 = vmatmul.msk.f32.vlgmr.msrb.gmra.mxu2 %vm376_vm8, %v1788_v3 }
 0x25e   : > { %1799 = vmatpush.msk.msra.mxu2 %vm345_vm0, %v2144_v29 }
 0x261   : > { %v1257_v7 = vpop.permute.xlu1 %1256  ;;  %v1457_v17 = vpop.permute.xlu2 %1456 }
 0x262   : > { %v1261_v9 = vsel %vm599_vm4, %v1257_v7, %v1259_v6  ;;  %v1255_v10 = vpop.permute.xlu0 %1254 }
 0x263   : > { %v1260_v13 = vsel %vm599_vm4, %v1255_v10, %v1257_v7  ;;  %1796 = vmatpush.msk.msra.mxu1 %vm345_vm0, %v1261_v9 }
 0x264   : > { %1794 = vmatpush.msk.msra.mxu0 %vm345_vm0, %v1260_v13  ;;  %1797 = vmatmul.msk.f32.vlgmr.msra.gmra.mxu1 %vm376_vm8, %v1793_v8 }
 0x265   : > { %1802 = vmatmul.msk.f32.vlgmr.msra.gmra.mxu3 %vm376_vm8, %v1798_v12  ;;  %1795 = vmatmul.msk.f32.vlgmr.msra.gmra.mxu0 %vm376_vm8, %v1793_v8 }
 0x266   : > { %1800 = vmatmul.msk.f32.vlgmr.msra.gmra.mxu2 %vm376_vm8, %v1798_v12 }
 0x26a   : > { %v1597_v23 = vpop.permute.xlu2 %1596 }
 0x271   : > { %v1384_v14 = vpop.permute.xlu1 %1383 }
 0x272   : > { %v1388_v18 = vsel %vm577_vm3, %v1384_v14, %v1386_v11  ;;  %v1382_v19 = vpop.permute.xlu0 %1381  ;;  %v1526_v29 = vpop.permute.xlu2 %1525 }
 0x273   : > { %v1387_v16 = vsel %vm577_vm3, %v1382_v19, %v1384_v14  ;;  %1806 = vmatpush.msk.msrb.mxu1 %vm345_vm0, %v1388_v18 }
 0x274   : > { %1804 = vmatpush.msk.msrb.mxu0 %vm345_vm0, %v1387_v16  ;;  %1807 = vmatmul.msk.f32.vlgmr.msrb.gmra.mxu1 %vm376_vm8, %v1803_v15 }
 0x275   : > { %1805 = vmatmul.msk.f32.vlgmr.msrb.gmra.mxu0 %vm376_vm8, %v1803_v15 }
 0x279   : > { %v1455_v20 = vpop.permute.xlu1 %1454 }
 0x27a   : > { %v1459_v24 = vsel %vm498_vm2, %v1455_v20, %v1457_v17  ;;  %v1453_v21 = vpop.permute.xlu0 %1452 }
 0x27b   : > { %v1458_v22 = vsel %vm498_vm2, %v1453_v21, %v1455_v20  ;;  %1811 = vmatpush.msk.msrb.mxu3 %vm345_vm0, %v1459_v24 }
 0x27c   : > { %1809 = vmatpush.msk.msrb.mxu2 %vm345_vm0, %v1458_v22  ;;  %1812 = vmatmul.msk.f32.vlgmr.msrb.gmra.mxu3 %vm376_vm8, %v1808_v26 }
 0x27d   : > { %1810 = vmatmul.msk.f32.vlgmr.msrb.gmra.mxu2 %vm376_vm8, %v1808_v26 }
 0x289   : > { %v1595_v25 = vpop.permute.xlu1 %1594  ;;  %v1593_v30 = vpop.permute.xlu0 %1592 }
 0x28a   : > { %v1599_v27 = vsel %vm350_vm1, %v1595_v25, %v1597_v23  ;;  %v1598_v28 = vsel %vm350_vm1, %v1593_v30, %v1595_v25 }
 0x28b   : > { %1819 = vmatpush.msk.msra.mxu2 %vm345_vm0, %v1598_v28  ;;  %1821 = vmatpush.msk.msra.mxu3 %vm345_vm0, %v1599_v27 }
 0x28c   : > { %1820 = vmatmul.msk.f32.vlgmr.msra.gmra.mxu2 %vm376_vm8, %v1818_v34  ;;  %1822 = vmatmul.msk.f32.vlgmr.msra.gmra.mxu3 %vm376_vm8, %v1818_v34 }
 0x291   : > { %v1524_v42 = vpop.permute.xlu1 %1523  ;;  %v1522_v31 = vpop.permute.xlu0 %1521 }
 0x292   : > { %v1528_v33 = vsel %vm879_vm9, %v1524_v42, %v1526_v29  ;;  %v1527_v35 = vsel %vm879_vm9, %v1522_v31, %v1524_v42 }
 0x293   : > { %1814 = vmatpush.msk.msra.mxu0 %vm345_vm0, %v1527_v35  ;;  %1816 = vmatpush.msk.msra.mxu1 %vm345_vm0, %v1528_v33 }
 0x294   : > { %1815 = vmatmul.msk.f32.vlgmr.msra.gmra.mxu0 %vm376_vm8, %v1813_v32  ;;  %1817 = vmatmul.msk.f32.vlgmr.msra.gmra.mxu1 %vm376_vm8, %v1813_v32 }
 0x299   : > { %v1653_v7 = vpop.permute.xlu0 %1652  ;;  %v1663_v10 = vpop.permute.xlu1 %1662 }
 0x2cf   : > { %v1083_v36 = vpop.f32.mrf.mxu2  ;;  %v1103_v49 = vpop.f32.mrf.mxu3 }
 0x2d1   : > { %v1166_v39 = vpop.f32.mrf.mxu1 }
 0x2d2   : > { %v1146_v38 = vpop.f32.mrf.mxu0  ;;  %v1167_v56 = vadd.f32 %v1166_v39, %v1103_v49 }
 0x2d3   : > { %v1147_v40 = vadd.f32 %v1146_v38, %v1083_v36 }
 0x2df   : > { %v1235_v37 = vpop.f32.mrf.mxu3 }
 0x2e0   : > { %v1215_v50 = vpop.f32.mrf.mxu2  ;;  %v1239_v5 = vadd.f32 %v1235_v37, %v1167_v56 }
 0x2e1   : > { %v1306_v0 = vpop.f32.mrf.mxu1  ;;  %v1238_v45 = vadd.f32 %v1215_v50, %v1147_v40 }
 0x2e2   : > { %v1286_v44 = vpop.f32.mrf.mxu0  ;;  %v1310_v47 = vadd.f32 %v1306_v0, %v1239_v5 }
 0x2e3   : > { %v1309_v46 = vadd.f32 %v1286_v44, %v1238_v45 }
 0x2e8   : > { %v1362_v43 = vpop.f32.mrf.mxu3 }
 0x2e9   : > { %v1342_v41 = vpop.f32.mrf.mxu2  ;;  %v1366_v55 = vadd.f32 %v1362_v43, %v1310_v47 }
 0x2ea   : > { %v1365_v54 = vadd.f32 %v1342_v41, %v1309_v46 }
 0x2f1   : > { %v1433_v53 = vpop.f32.mrf.mxu1 }
 0x2f2   : > { %v1413_v52 = vpop.f32.mrf.mxu0  ;;  %v1437_v58 = vadd.f32 %v1433_v53, %v1366_v55 }
 0x2f3   : > { %v1436_v57 = vadd.f32 %v1413_v52, %v1365_v54 }
 0x2ff   : > { %v1504_v51 = vpop.f32.mrf.mxu3 }
 0x300   : > { %v1484_v48 = vpop.f32.mrf.mxu2  ;;  %v1508_v60 = vadd.f32 %v1504_v51, %v1437_v58 }
 0x301   : > { %v1507_v59 = vadd.f32 %v1484_v48, %v1436_v57 }
 0x30f   : > { %v1624_v61 = vpop.f32.mrf.mxu2  ;;  %v1644_v62 = vpop.f32.mrf.mxu3 }
 0x311   : > { %v1553_v63 = vpop.f32.mrf.mxu0  ;;  %v1573_v1 = vpop.f32.mrf.mxu1 }
 0x312   : > { %v1576_v2 = vadd.f32 %v1553_v63, %v1507_v59  ;;  %v1577_v3 = vadd.f32 %v1573_v1, %v1508_v60 }
 0x314   : > { %v1647_v4 = vadd.f32 %v1624_v61, %v1576_v2  ;;  %v1648_v6 = vadd.f32 %v1644_v62, %v1577_v3 }
 0x316   : > { %v1655_v8 = vadd.f32 %v1653_v7, %v1647_v4  ;;  %v1656_v9 = vadd.f32 %v1653_v7, %v1648_v6 }
 0x318   : > { %vm1657_vm12 = vcmp.gt.f32.partialorder %v1655_v8, 0.0  ;;  %v1665_v12 = vmul.f32 %v1663_v10, %v1655_v8  ;;  %vm1658_vm13 = vcmp.gt.f32.partialorder %v1656_v9, 0.0  ;;  %v1666_v13 = vmul.f32 %v1663_v10, %v1656_v9 }
 0x31a   : > { %v1667_v11 = vsel %vm1657_vm12, %v1655_v8, %v1665_v12  ;;  %v1668_v14 = vsel %vm1658_vm13, %v1656_v9, %v1666_v13 }
 0x31b   : > { %1669 = vst [vmem:[%s332_s25] sm:$0xff] %v1667_v11 }
 0x31c   : > { %1670 = vst [vmem:[%s332_s25 + $0x8] sm:$0xff] %v1668_v14 }
 0x31d PF: > { %s19_s30 = sadd.s32 1, %s1853_s30  }
 0x31e   : > { %p16_p4 = scmp.ge.s32.totalorder %s19_s30, 4  }
 0x320   :  { %18 = sbr.rel (!%p16_p4) target bundleno = 1 (0x1), region = 118 }

</bundles_post_ra>
